<compile_context>
chip_gen: v5e
topology: v5e:2x2
jax: 0.10.0
libtpu: 0.0.40
codegen_flags: <defaults>
</compile_context>

<pallas_src>
import jax
import jax.numpy as jnp
from jax.experimental import pallas as pl
from jax.experimental.pallas import tpu as pltpu

IN_DIM = 1472          # zoomout feature dim (block last-dim == full dim, no pad)
H1 = 256
H2 = 128
N_CLASSES = 21
C_PAD = 128            # classes padded to one lane width -> unmasked stores


def fc_classifier_kernel(x_ref, w1_ref, b1_ref, w2_ref, b2_ref, w3_ref, b3_ref,
                         o_ref):
    # In-kernel bf16 cast of the x tile (no-op if the caller already passes
    # bf16).  Normalization is folded into w1/b1, so raw x feeds fc1 directly.
    x = x_ref[...].astype(jnp.bfloat16)

    # fc1 + ReLU  (bf16 MXU operands, f32 accumulate; bias/ReLU in f32)
    h = jnp.dot(x, w1_ref[...], preferred_element_type=jnp.float32) + b1_ref[...]
    h = jnp.maximum(h, 0.0)

    # fc2 + ReLU
    h = jnp.dot(h.astype(jnp.bfloat16), w2_ref[...],
                preferred_element_type=jnp.float32) + b2_ref[...]
    h = jnp.maximum(h, 0.0)

    # fc3 + ReLU  (classes padded to 128 -> lane-dense unmasked stores)
    h = jnp.dot(h.astype(jnp.bfloat16), w3_ref[...],
                preferred_element_type=jnp.float32) + b3_ref[...]
    h = jnp.maximum(h, 0.0)

    o_ref[...] = h.astype(o_ref.dtype)   # bf16 output: half the writeback bytes


def prepare_params(mean, std, w1, b1, w2, b2, w3, b3):
    """One-time constant fold + cast.

    Folds normalization into fc1, pads only the tiny class dim (21 -> 128) of
    fc3, and casts matmul operands to bf16.  Weights are expected in
    (in_features, out_features) layout (transposed vs torch nn.Linear storage).
    """
    inv = 1.0 / (std + 0.001)                         # (1, IN_DIM)
    w1f = inv.reshape(-1, 1) * w1                     # scale rows of w1
    b1f = b1 - (mean * inv) @ w1                      # (1, H1)

    w3p = jnp.zeros((H2, C_PAD), jnp.float32).at[:, :N_CLASSES].set(w3)
    b3p = jnp.zeros((1, C_PAD), jnp.float32).at[:, :N_CLASSES].set(b3)

    return (w1f.astype(jnp.bfloat16), b1f.astype(jnp.float32),
            w2.astype(jnp.bfloat16), b2.astype(jnp.float32),
            w3p.astype(jnp.bfloat16), b3p)


def _pick_tile_m(n, max_tile):
    """Batch tile size: as large as VMEM allows (cap), but split into >= 2
    tiles whenever possible so the 'parallel' grid axis can shard across both
    v7x TensorCores.  Rounded up to the 8-row sublane granule."""
    if n >= 2 * max_tile:
        return max_tile
    half = pl.cdiv(n, 2)
    return int(max(8, min(max_tile, 8 * pl.cdiv(half, 8))))


def fc_classifier_forward(x, params, *, max_tile_m=1024):
    """x: (N, 1472) f32 or bf16 (no copies made).  params: prepare_params(...).
    Returns (N, 21) f32.

    NOTE: the boundary grid block may be ragged; its pad rows hold unspecified
    data.  This is safe because the kernel has no cross-row reductions and
    Pallas masks out-of-range output stores -- do not add row reductions /
    softmax over the batch axis without reinstating explicit batch padding.
    """
    w1, b1, w2, b2, w3, b3 = params
    N, D = x.shape
    assert D == IN_DIM

    tile_m = _pick_tile_m(N, max_tile_m)
    n_tiles = pl.cdiv(N, tile_m)

    # Resident (constant index_map) operands: single-buffer to save VMEM.
    def resident(shape):
        return pl.BlockSpec(shape, lambda i: (0, 0),
                            pipeline_mode=pl.Buffered(1))

    flops = 2 * N * (IN_DIM * H1 + H1 * H2 + H2 * N_CLASSES)
    bytes_accessed = (int(x.size) * x.dtype.itemsize          # stream x once
                      + N * C_PAD * 2                          # bf16 output
                      + sum(int(p.size) * p.dtype.itemsize for p in params))

    out = pl.pallas_call(
        fc_classifier_kernel,
        out_shape=jax.ShapeDtypeStruct((N, C_PAD), jnp.bfloat16),
        grid_spec=pltpu.PrefetchScalarGridSpec(
            num_scalar_prefetch=0,
            grid=(n_tiles,),
            in_specs=[
                pl.BlockSpec((tile_m, IN_DIM), lambda i: (i, 0)),  # x tile
                resident((IN_DIM, H1)),   # w1 (bf16, norm folded in)
                resident((1, H1)),        # b1 (f32)
                resident((H1, H2)),       # w2 (bf16)
                resident((1, H2)),        # b2 (f32)
                resident((H2, C_PAD)),    # w3 (bf16, classes padded)
                resident((1, C_PAD)),     # b3 (f32)
            ],
            out_specs=pl.BlockSpec((tile_m, C_PAD), lambda i: (i, 0)),
        ),
        compiler_params=pltpu.CompilerParams(
            dimension_semantics=("parallel",),      # megacore-shardable
            vmem_limit_bytes=32 * 1024 * 1024),     # safe on v5e/v6e/v7x
        cost_estimate=pl.CostEstimate(flops=flops, transcendentals=0,
                                      bytes_accessed=bytes_accessed),
    )(x, w1, b1, w2, b2, w3, b3)

    return out[:N, :N_CLASSES].astype(jnp.float32)


def _torch_linear_init(key, fan_in, fan_out):
    """Deterministic init mimicking torch.nn.Linear (uniform +-1/sqrt(fan_in)),
    stored as (in_features, out_features)."""
    kw, kb = jax.random.split(key)
    bound = 1.0 / jnp.sqrt(jnp.float32(fan_in))
    w = jax.random.uniform(kw, (fan_in, fan_out), jnp.float32, -bound, bound)
    b = jax.random.uniform(kb, (1, fan_out), jnp.float32, -bound, bound)
    return w, b


def reference_forward(x, mean, std, w1, b1, w2, b2, w3, b3):
    h = (x - mean) / (std + 0.001)
    h = jnp.maximum(h @ w1 + b1, 0.0)
    h = jnp.maximum(h @ w2 + b2, 0.0)
    h = jnp.maximum(h @ w3 + b3, 0.0)
    return h


if __name__ == "__main__":
    key = jax.random.PRNGKey(0)
    k_x, k_mean, k_std, k1, k2, k3 = jax.random.split(key, 6)

    # Small deterministic example: batch of 64 zoomout feature vectors.
    N = 64
    x = jax.random.normal(k_x, (N, IN_DIM), jnp.float32)

    # Synthetic normalization stats (stand-in for features/mean.npy, std.npy).
    mean = jax.random.normal(k_mean, (1, IN_DIM), jnp.float32)
    std = jnp.abs(jax.random.normal(k_std, (1, IN_DIM), jnp.float32)) + 0.5

    w1, b1 = _torch_linear_init(k1, IN_DIM, H1)
    w2, b2 = _torch_linear_init(k2, H1, H2)
    w3, b3 = _torch_linear_init(k3, H2, N_CLASSES)

    # One-time parameter preparation (fold normalization, pad classes, bf16).
    params = prepare_params(mean, std, w1, b1, w2, b2, w3, b3)

    out = fc_classifier_forward(x, params)
    out = jax.block_until_ready(out)

    ref = reference_forward(x, mean, std, w1, b1, w2, b2, w3, b3)
    assert out.shape == (N, N_CLASSES)
    # bf16 matmul operands + bf16 output store with f32 accumulation.
    assert jnp.allclose(out, ref, atol=3e-2, rtol=3e-2)

    print("KERNEL_OK")
</pallas_src>

<mosaic_0001>
module attributes {stable_mosaic.version = 11 : i64} {
  func.func @fc_classifier_kernel(%arg0: i32, %arg1: memref<32x1472xf32, #tpu.memory_space<vmem>>, %arg2: memref<1472x256xbf16, #tpu.memory_space<vmem>>, %arg3: memref<1x256xf32, #tpu.memory_space<vmem>>, %arg4: memref<256x128xbf16, #tpu.memory_space<vmem>>, %arg5: memref<1x128xf32, #tpu.memory_space<vmem>>, %arg6: memref<128x128xbf16, #tpu.memory_space<vmem>>, %arg7: memref<1x128xf32, #tpu.memory_space<vmem>>, %arg8: memref<32x128xbf16, #tpu.memory_space<vmem>>) attributes {dimension_semantics = [#tpu.dimension_semantics<parallel>], iteration_bounds = array<i64: 2>, scalar_prefetch = 0 : i64, scratch_operands = 0 : i64, tpu.core_type = #tpu.core_type<tc>, window_params = [{transform_indices = @transform_0, window_bounds = array<i64: 32, 1472>}, {pipeline_mode = #tpu.pipeline_mode<synchronous>, transform_indices = @transform_1, window_bounds = array<i64: 1472, 256>}, {pipeline_mode = #tpu.pipeline_mode<synchronous>, transform_indices = @transform_2, window_bounds = array<i64: 1, 256>}, {pipeline_mode = #tpu.pipeline_mode<synchronous>, transform_indices = @transform_3, window_bounds = array<i64: 256, 128>}, {pipeline_mode = #tpu.pipeline_mode<synchronous>, transform_indices = @transform_4, window_bounds = array<i64: 1, 128>}, {pipeline_mode = #tpu.pipeline_mode<synchronous>, transform_indices = @transform_5, window_bounds = array<i64: 128, 128>}, {pipeline_mode = #tpu.pipeline_mode<synchronous>, transform_indices = @transform_6, window_bounds = array<i64: 1, 128>}, {transform_indices = @transform_7, window_bounds = array<i64: 32, 128>}]} {
    %c0 = arith.constant 0 : index
    %c0_0 = arith.constant 0 : index
    %0 = vector.load %arg1[%c0, %c0_0] : memref<32x1472xf32, #tpu.memory_space<vmem>>, vector<32x1472xf32>
    %1 = arith.truncf %0 : vector<32x1472xf32> to vector<32x1472xbf16>
    %c0_1 = arith.constant 0 : index
    %c0_2 = arith.constant 0 : index
    %2 = vector.load %arg2[%c0_1, %c0_2] : memref<1472x256xbf16, #tpu.memory_space<vmem>>, vector<1472x256xbf16>
    %cst = arith.constant dense<0.000000e+00> : vector<32x256xf32>
    %3 = tpu.matmul %1, %2, %cst {dimension_numbers = #tpu.dot_dimension_numbers<[1], [0], [0], [1], [0, 0, 1, 1], [], []>} : vector<32x1472xbf16>, vector<1472x256xbf16>, vector<32x256xf32> -> vector<32x256xf32>
    %c0_3 = arith.constant 0 : index
    %c0_4 = arith.constant 0 : index
    %4 = vector.load %arg3[%c0_3, %c0_4] : memref<1x256xf32, #tpu.memory_space<vmem>>, vector<1x256xf32>
    %5 = vector.broadcast %4 : vector<1x256xf32> to vector<32x256xf32>
    %6 = arith.addf %3, %5 : vector<32x256xf32>
    %cst_5 = arith.constant 0.000000e+00 : f32
    %7 = vector.broadcast %cst_5 : f32 to vector<32x256xf32>
    %8 = arith.maximumf %6, %7 : vector<32x256xf32>
    %9 = arith.truncf %8 : vector<32x256xf32> to vector<32x256xbf16>
    %c0_6 = arith.constant 0 : index
    %c0_7 = arith.constant 0 : index
    %10 = vector.load %arg4[%c0_6, %c0_7] : memref<256x128xbf16, #tpu.memory_space<vmem>>, vector<256x128xbf16>
    %cst_8 = arith.constant dense<0.000000e+00> : vector<32x128xf32>
    %11 = tpu.matmul %9, %10, %cst_8 {dimension_numbers = #tpu.dot_dimension_numbers<[1], [0], [0], [1], [0, 0, 1, 1], [], []>} : vector<32x256xbf16>, vector<256x128xbf16>, vector<32x128xf32> -> vector<32x128xf32>
    %c0_9 = arith.constant 0 : index
    %c0_10 = arith.constant 0 : index
    %12 = vector.load %arg5[%c0_9, %c0_10] : memref<1x128xf32, #tpu.memory_space<vmem>>, vector<1x128xf32>
    %13 = vector.broadcast %12 : vector<1x128xf32> to vector<32x128xf32>
    %14 = arith.addf %11, %13 : vector<32x128xf32>
    %cst_11 = arith.constant 0.000000e+00 : f32
    %15 = vector.broadcast %cst_11 : f32 to vector<32x128xf32>
    %16 = arith.maximumf %14, %15 : vector<32x128xf32>
    %17 = arith.truncf %16 : vector<32x128xf32> to vector<32x128xbf16>
    %c0_12 = arith.constant 0 : index
    %c0_13 = arith.constant 0 : index
    %18 = vector.load %arg6[%c0_12, %c0_13] : memref<128x128xbf16, #tpu.memory_space<vmem>>, vector<128x128xbf16>
    %cst_14 = arith.constant dense<0.000000e+00> : vector<32x128xf32>
    %19 = tpu.matmul %17, %18, %cst_14 {dimension_numbers = #tpu.dot_dimension_numbers<[1], [0], [0], [1], [0, 0, 1, 1], [], []>} : vector<32x128xbf16>, vector<128x128xbf16>, vector<32x128xf32> -> vector<32x128xf32>
    %c0_15 = arith.constant 0 : index
    %c0_16 = arith.constant 0 : index
    %20 = vector.load %arg7[%c0_15, %c0_16] : memref<1x128xf32, #tpu.memory_space<vmem>>, vector<1x128xf32>
    %21 = vector.broadcast %20 : vector<1x128xf32> to vector<32x128xf32>
    %22 = arith.addf %19, %21 : vector<32x128xf32>
    %cst_17 = arith.constant 0.000000e+00 : f32
    %23 = vector.broadcast %cst_17 : f32 to vector<32x128xf32>
    %24 = arith.maximumf %22, %23 : vector<32x128xf32>
    %25 = arith.truncf %24 : vector<32x128xf32> to vector<32x128xbf16>
    %c0_18 = arith.constant 0 : index
    %c0_19 = arith.constant 0 : index
    %26 = vector.load %arg8[%c0_18, %c0_19] : memref<32x128xbf16, #tpu.memory_space<vmem>>, vector<32x128xbf16>
    tpu.vector_store %arg8[%c0_18, %c0_19], %25 {strides = array<i32>} : memref<32x128xbf16, #tpu.memory_space<vmem>>, vector<32x128xbf16>,
    return
  }
  func.func @transform_0(%arg0: i32) -> (i32, i32) {
    %c0_i32 = arith.constant 0 : i32
    %c0_i32_0 = arith.constant 0 : i32
    return %arg0, %c0_i32 : i32, i32
  }
  func.func @transform_1(%arg0: i32) -> (i32, i32) {
    %c0_i32 = arith.constant 0 : i32
    %c0_i32_0 = arith.constant 0 : i32
    %c0_i32_1 = arith.constant 0 : i32
    return %c0_i32, %c0_i32_0 : i32, i32
  }
  func.func @transform_2(%arg0: i32) -> (i32, i32) {
    %c0_i32 = arith.constant 0 : i32
    %c0_i32_0 = arith.constant 0 : i32
    %c0_i32_1 = arith.constant 0 : i32
    return %c0_i32, %c0_i32_0 : i32, i32
  }
  func.func @transform_3(%arg0: i32) -> (i32, i32) {
    %c0_i32 = arith.constant 0 : i32
    %c0_i32_0 = arith.constant 0 : i32
    %c0_i32_1 = arith.constant 0 : i32
    return %c0_i32, %c0_i32_0 : i32, i32
  }
  func.func @transform_4(%arg0: i32) -> (i32, i32) {
    %c0_i32 = arith.constant 0 : i32
    %c0_i32_0 = arith.constant 0 : i32
    %c0_i32_1 = arith.constant 0 : i32
    return %c0_i32, %c0_i32_0 : i32, i32
  }
  func.func @transform_5(%arg0: i32) -> (i32, i32) {
    %c0_i32 = arith.constant 0 : i32
    %c0_i32_0 = arith.constant 0 : i32
    %c0_i32_1 = arith.constant 0 : i32
    return %c0_i32, %c0_i32_0 : i32, i32
  }
  func.func @transform_6(%arg0: i32) -> (i32, i32) {
    %c0_i32 = arith.constant 0 : i32
    %c0_i32_0 = arith.constant 0 : i32
    %c0_i32_1 = arith.constant 0 : i32
    return %c0_i32, %c0_i32_0 : i32, i32
  }
  func.func @transform_7(%arg0: i32) -> (i32, i32) {
    %c0_i32 = arith.constant 0 : i32
    %c0_i32_0 = arith.constant 0 : i32
    return %arg0, %c0_i32 : i32, i32
  }
}

</mosaic_0001>

<bundles_post_ra>
// kernel: tpu_custom_call.1
= control target key start
LH: loop header
LB: loop body
LE: loop exit
PB: predicated region body
PF: predicated region fallthrough
CT: control target
= control target key end

     0   :  { %s4267_s0 = inlined_call_operand.hbm [shape: f32[64,1472], index: 0, kind: input, shape index: {}]   ;;  %s4268_s1 = inlined_call_operand.hbm [shape: bf16[1472,256], index: 1, kind: input, shape index: {}]   ;;  %s4269_s2 = inlined_call_operand.hbm [shape: f32[1,256], index: 2, kind: input, shape index: {}]   ;;  %s4270_s3 = inlined_call_operand.hbm [shape: bf16[256,128], index: 3, kind: input, shape index: {}]   ;;  %s4271_s4 = inlined_call_operand.vmem [shape: f32[1,128], index: 4, kind: input, shape index: {}]   ;;  %s4272_s5 = inlined_call_operand.hbm [shape: bf16[128,128], index: 5, kind: input, shape index: {}]   ;;  %s4273_s6 = inlined_call_operand.vmem [shape: f32[1,128], index: 6, kind: input, shape index: {}]   ;;  %s4274_s7 = inlined_call_operand.hbm [shape: bf16[64,128], index: 7, kind: output, shape index: {}]  }
   0x1   :  { %4275 = sst [smem:[#allocation16_spill]] %s4268_s1 }
   0x2   :  { %4276 = sst [smem:[#allocation17_spill]] %s4269_s2 }
   0x3   :  { %4277 = sst [smem:[#allocation18_spill]] %s4270_s3 }
   0x4   :  { %12 = vsyncpa [#allocation3], 0 }
   0x5   :  { %14 = vsyncpa [#allocation3 + $0x1], 0 }
   0x6   :  { %15 = vsyncpa [#allocation6], 0 }
   0x7   :  { %16 = vsyncpa [#allocation9], 0 }
   0x8   :  { %17 = vsyncpa [#allocation4], 0 }
   0x9   :  { %19 = vsyncpa [#allocation4 + $0x1], 0  ;;  %s3889_s24 = smov 0   ;;  %s3891_s25 = smov 0  }
   0xa   :  { %s3893_s26 = smov 0   ;;  %s3895_s27 = smov 0  }
   0xb LB: > { %s3910_s28 = sadd.s32 4294967295, %s3835_s27   ;;  %s2426_s29 = sadd.s32 4294967294, %s3835_s27   ;;  %s3835_s27 = sphi %s3895_s27, %s4291_s27   ;;  %s3831_s26 = sphi %s3893_s26, %s4290_s26   ;;  %s3827_s25 = sphi %s3891_s25, %s4289_s25   ;;  %s3823_s24 = sphi %s3889_s24, %s4288_s24  }
   0xc   : > { %p45_p0 = scmp.ne.s32.totalorder %s3827_s25, %s3823_s24  ;;  %p46_p1 = scmp.eq.s32.totalorder %s3910_s28, 0 }
   0xd   : > { %p195_p2 = scmp.eq.s32.totalorder %s3910_s28, 1  ;;  %p201_p3 = scmp.eq.s32.totalorder %s2426_s29, 1 }
   0xe   : > { %p3919_p4 = por %p46_p1, %p45_p0  ;;  %p2427_p5 = scmp.ge.s32.totalorder %s3835_s27, 1 }
   0xf   : > { %p3924_p6 = por %p201_p3, %p45_p0  ;;  %p208_p7 = scmp.lt.s32.totalorder %s3835_s27, 3 }
  0x10   : > { %s4280_s1 = sld [smem:[#allocation16_spill]]  ;;  %s3837_s13 = smov [#allocation5]  }
  0x11   : > { %p3932_p8 = pnand %p2427_p5, %p208_p7  ;;  %s221_s14 = sshll.u32 %s3837_s13, 4  ;;  %s222_s14 = int_to_ptr.vmem [resolvable:$true] %s221_s14 }
  0x12   : > { %s4283_s3 = sld [smem:[#allocation18_spill]]  ;;  %s3838_s19 = smov 128  }
  0x13   : > { %p3534_p9 = pneg %p3932_p8  ;;  %s3839_s20 = smov 8  }
  0x14   : > { %s3840_s21 = smov [#allocation8]   ;;  %s3841_s23 = smov 64  }
  0x15   : > { %p3940_p10 = pnand %p3534_p9, %p46_p1  ;;  %s247_s22 = sshll.u32 %s3840_s21, 4  ;;  %s248_s22 = int_to_ptr.vmem [resolvable:$true] %s247_s22 }
  0x16   : > { %s219_s11 = sshll.u32 %s4280_s1, 4  ;;  %s3842_s29 = smov 4   ;;  %s220_s11 = int_to_ptr.hbm [resolvable:$true] %s219_s11 }
  0x17   : > { %3537 = dma.hbm_to_vmem [thread:$0]  (!%p3940_p10), %s220_s11, 23552, %s222_s14, [#allocation6], %s3838_s19, %s3838_s19, %s3839_s20  }
  0x18   : > { %s245_s18 = sshll.u32 %s4283_s3, 4  ;;  %s4284_s2 = sld [smem:[#allocation17_spill]]  ;;  %s246_s18 = int_to_ptr.hbm [resolvable:$true] %s245_s18 }
  0x19   : > { %3543 = dma.hbm_to_vmem [thread:$0]  (!%p3940_p10), %s246_s18, 2048, %s248_s22, [#allocation9], %s3841_s23, %s3841_s23, %s3842_s29  }
  0x1a   : > { %s3843_s11 = smov [#allocation7]   ;;  %s262_s19 = sshll.u32 %s4272_s5, 4  ;;  %s263_s19 = int_to_ptr.hbm [resolvable:$true] %s262_s19 }
  0x1b   : > { %s236_s14 = sshll.u32 %s3843_s11, 4  ;;  %s3844_s18 = smov [#allocation10]   ;;  %s237_s14 = int_to_ptr.vmem [resolvable:$true] %s236_s14 }
  0x1c   : > { %s264_s20 = sshll.u32 %s3844_s18, 4  ;;  %s3963_s21 = sadd.s32 1, %s3835_s27   ;;  %s265_s20 = int_to_ptr.vmem [resolvable:$true] %s264_s20 }
  0x1d   : > { %3546 = dma.hbm_to_vmem [thread:$0]  (!%p3940_p10), %s263_s19, 1024, %s265_s20, [#allocation9], %s3841_s23, %s3841_s23, %s3842_s29  }
  0x1e   : > { %s234_s13 = sshll.u32 %s4284_s2, 4  ;;  %s32_s22 = sadd.s32 1, %s3831_s26  ;;  %s235_s13 = int_to_ptr.hbm [resolvable:$true] %s234_s13 }
  0x1f   : > { %3540 = dma.hbm_to_vmem [thread:$0]  (!%p3940_p10), %s235_s13, 32, %s237_s14, [#allocation6]  }
  0x20   : > { %s29_s9 = ssub.s32 %s3835_s27, %s3963_s21  ;;  %p39_p12 = scmp.ne.s32.totalorder %s3831_s26, %s3827_s25 }
  0x21   : > { %p30_p13 = scmp.eq.s32.totalorder %s29_s9, 0  ;;  %p40_p0 = scmp.eq.s32.totalorder %s3835_s27, 0 }
  0x22   : > { %p3973_p3 = por %p195_p2, %p39_p12  ;;  %p3559_p5 = scmp.lt.s32.totalorder %s3835_s27, 2 }
  0x23   : > { %s3979_s13 = scalar_select %p30_p13, %s3831_s26, %s32_s22  }
  0x24   : > { %p41_p7 = por %p40_p0, %p39_p12  ;;  %s281_s11 = sand.u32 1, %s3831_s26  }
  0x25   : > { %s3511_s15 = smul.u32 384, %s281_s11  ;;  %s282_s22 = scalar_lea.sflag [#allocation3], %s281_s11 }
  0x26   : > { %s3512_s23 = smul.u32 384, %s3835_s27  ;;  %p3983_p9 = pnand %p3559_p5, %p41_p7 }
  0x27   : > { %s285_s19 = scalar_lea.vmem [#allocation2], %s3511_s15  ;;  %s3738_s14 = scalar_lea.hbm %s4267_s0, 768 }
  0x28   : > { %s291_s17 = scalar_lea.hbm %s4267_s0, %s3512_s23  ;;  %s294_s18 = sshll.u32 %s285_s19, 4  ;;  %s295_s18 = int_to_ptr.vmem [resolvable:$true] %s294_s18 }
  0x29   : > { %s292_s20 = sshll.u32 %s291_s17, 4  ;;  %p3735_p10 = pneg %p3983_p9  ;;  %s293_s20 = int_to_ptr.hbm [resolvable:$true] %s292_s20 }
  0x2a   : > { %s3731_s9 = sshra.s32 %s293_s20, 4  ;;  %s3732_s9 = int_to_ptr.hbm [resolvable:$true] %s3731_s9 }
  0x2b   : > { %s3733_s1 = scalar_lea.hbm %s3732_s9, 384  ;;  %p3739_p0 = scmp.lt.s32.totalorder %s3732_s9, %s4267_s0 }
  0x2c   : > { %p3734_p2 = scmp.ne.s32.totalorder %s3732_s9, %s3733_s1  ;;  %p3740_p5 = scmp.lt.s32.totalorder %s3738_s14, %s3733_s1 }
  0x2e   : > { %p3736_p12 = pnand %p3735_p10, %p3734_p2  ;;  %p3741_p7 = por %p3740_p5, %p3739_p0 }
  0x30   : > { %p3737_p13 = pneg %p3736_p12 }
  0x32   : > { %p3742_p11 = pnand %p3741_p7, %p3737_p13 }
  0x34   : > { %3745 = shalt.err (!%p3742_p11)
}
  0x35   : > { %s3845_s11 = smov 1536   ;;  %s3846_s15 = smov 96  }
  0x36   : > { %3550 = dma.hbm_to_vmem [thread:$0]  (!%p3983_p9), %s293_s20, 6144, %s295_s18, %s282_s22, %s3845_s11, %s3845_s11, %s3846_s15  }
  0x37   : > { %306 = sbr.rel (%p3932_p8) target bundleno = 715 (0x2cb), region = 48  ;;  %s4003_s2 = sand.u32 (!%p3932_p8), 1, %s3827_s25  }
  0x38   : > { %s3513_s3 = smul.u32 (!%p3932_p8), 384, %s4003_s2  ;;  %s309_s17 = scalar_lea.sflag (!%p3932_p8), [#allocation3], %s4003_s2 }
  0x3a   : > { %s4007_s1 = scalar_lea.vmem (!%p3932_p8), [#allocation2], %s3513_s3 }
  0x3c   : > { %3806 = dma.done.wait (%p3919_p4), %s309_s17, 6144  }
  0x3d   : > { %3808 = vsyncadd (%p3919_p4), %s309_s17, 4294961152 }
  0x3e   : > { %3810 = dma.done.wait (%p46_p1), [#allocation6], 23584  }
  0x3f   : > { %3812 = vsyncadd (%p46_p1), [#allocation6], 4294943712 }
  0x40   : > { %3814 = dma.done.wait (%p46_p1), [#allocation9], 3072  }
  0x41   : > { %3816 = vsyncadd (%p46_p1), [#allocation9], 4294964224  ;;  %v2500_v0 = vld [vmem:[#allocation5 + $0x70] sm:$0xf]  ;;  %v3298_v1 = vld [vmem:[#allocation5 + $0x74] sm:$0xf0] }
  0x42   : > { %v2564_v2 = vld [vmem:[#allocation5 + $0xf0] sm:$0xf]  ;;  %v2501_v3 = vor.u32 %v3298_v1, %v2500_v0  ;;  %v3314_v4 = vld [vmem:[#allocation5 + $0xf4] sm:$0xf0]  ;;  %v2492_v11 = vld [vmem:[#allocation5 + $0x60] sm:$0xf] }
  0x43   : > { %v2628_v5 = vld [vmem:[#allocation5 + $0x170] sm:$0xf]  ;;  %v3330_v6 = vld [vmem:[#allocation5 + $0x174] sm:$0xf0]  ;;  %v2565_v7 = vor.u32 %v3314_v4, %v2564_v2  ;;  %v3296_v13 = vld [vmem:[#allocation5 + $0x64] sm:$0xf0] }
  0x44   : > { %v2629_v8 = vor.u32 %v3330_v6, %v2628_v5  ;;  %v2692_v9 = vld [vmem:[#allocation5 + $0x1f0] sm:$0xf]  ;;  %v3346_v10 = vld [vmem:[#allocation5 + $0x1f4] sm:$0xf0]  ;;  %1556 = vmatpush.bf16.msra.mxu0 %v2501_v3  ;;  %v2556_v14 = vld [vmem:[#allocation5 + $0xe0] sm:$0xf]  ;;  %v2493_v16 = vor.u32 %v3296_v13, %v2492_v11 }
  0x45   : > { %v2693_v12 = vor.u32 %v3346_v10, %v2692_v9  ;;  %v3312_v15 = vld [vmem:[#allocation5 + $0xe4] sm:$0xf0]  ;;  %1575 = vmatpush.bf16.msra.mxu1 %v2565_v7  ;;  %v2620_v18 = vld [vmem:[#allocation5 + $0x160] sm:$0xf]  ;;  %v2484_v23 = vld [vmem:[#allocation5 + $0x50] sm:$0xf] }
  0x46   : > { %1594 = vmatpush.bf16.msra.mxu2 %v2629_v8  ;;  %v2557_v17 = vor.u32 %v3312_v15, %v2556_v14  ;;  %v3328_v19 = vld [vmem:[#allocation5 + $0x164] sm:$0xf0]  ;;  %v2684_v20 = vld [vmem:[#allocation5 + $0x1e0] sm:$0xf]  ;;  %v3294_v24 = vld [vmem:[#allocation5 + $0x54] sm:$0xf0] }
  0x47   : > { %1613 = vmatpush.bf16.msra.mxu3 %v2693_v12  ;;  %v2621_v21 = vor.u32 %v3328_v19, %v2620_v18  ;;  %v3344_v22 = vld [vmem:[#allocation5 + $0x1e4] sm:$0xf0]  ;;  %v2548_v26 = vld [vmem:[#allocation5 + $0xd0] sm:$0xf]  ;;  %v3310_v27 = vld [vmem:[#allocation5 + $0xd4] sm:$0xf0]  ;;  %v2485_v29 = vor.u32 %v3294_v24, %v2484_v23 }
  0x48   : > { %v2685_v25 = vor.u32 %v3344_v22, %v2684_v20  ;;  %v2612_v28 = vld [vmem:[#allocation5 + $0x150] sm:$0xf]  ;;  %1557 = vmatpush.bf16.msra.mxu0 %v2493_v16  ;;  %v3326_v30 = vld [vmem:[#allocation5 + $0x154] sm:$0xf0]  ;;  %v2549_v33 = vor.u32 %v3310_v27, %v2548_v26  ;;  %v2476_v35 = vld [vmem:[#allocation5 + $0x40] sm:$0xf] }
  0x49   : > { %v2676_v31 = vld [vmem:[#allocation5 + $0x1d0] sm:$0xf]  ;;  %v3342_v32 = vld [vmem:[#allocation5 + $0x1d4] sm:$0xf0]  ;;  %1576 = vmatpush.bf16.msra.mxu1 %v2557_v17  ;;  %v2613_v34 = vor.u32 %v3326_v30, %v2612_v28  ;;  %v3292_v36 = vld [vmem:[#allocation5 + $0x44] sm:$0xf0] }
  0x4a   : > { %1595 = vmatpush.bf16.msra.mxu2 %v2621_v21  ;;  %v2540_v37 = vld [vmem:[#allocation5 + $0xc0] sm:$0xf]  ;;  %v2677_v38 = vor.u32 %v3342_v32, %v2676_v31  ;;  %v3308_v39 = vld [vmem:[#allocation5 + $0xc4] sm:$0xf0]  ;;  %v2477_v44 = vor.u32 %v3292_v36, %v2476_v35  ;;  %v2468_v47 = vld [vmem:[#allocation5 + $0x30] sm:$0xf] }
  0x4b   : > { %1614 = vmatpush.bf16.msra.mxu3 %v2685_v25  ;;  %v2604_v40 = vld [vmem:[#allocation5 + $0x140] sm:$0xf]  ;;  %v3324_v41 = vld [vmem:[#allocation5 + $0x144] sm:$0xf0]  ;;  %v2541_v45 = vor.u32 %v3308_v39, %v2540_v37  ;;  %v3290_v48 = vld [vmem:[#allocation5 + $0x34] sm:$0xf0] }
  0x4c   : > { %v2668_v42 = vld [vmem:[#allocation5 + $0x1c0] sm:$0xf]  ;;  %v3340_v43 = vld [vmem:[#allocation5 + $0x1c4] sm:$0xf0]  ;;  %1558 = vmatpush.bf16.msra.mxu0 %v2485_v29  ;;  %v2605_v46 = vor.u32 %v3324_v41, %v2604_v40  ;;  %v2532_v49 = vld [vmem:[#allocation5 + $0xb0] sm:$0xf]  ;;  %v2469_v56 = vor.u32 %v3290_v48, %v2468_v47 }
  0x4d   : > { %1577 = vmatpush.bf16.msra.mxu1 %v2549_v33  ;;  %v2669_v50 = vor.u32 %v3340_v43, %v2668_v42  ;;  %v3306_v51 = vld [vmem:[#allocation5 + $0xb4] sm:$0xf0]  ;;  %v2596_v52 = vld [vmem:[#allocation5 + $0x130] sm:$0xf]  ;;  %v2460_v59 = vld [vmem:[#allocation5 + $0x20] sm:$0xf] }
  0x4e   : > { %1596 = vmatpush.bf16.msra.mxu2 %v2613_v34  ;;  %v3322_v53 = vld [vmem:[#allocation5 + $0x134] sm:$0xf0]  ;;  %v2660_v54 = vld [vmem:[#allocation5 + $0x1b0] sm:$0xf]  ;;  %v2533_v57 = vor.u32 %v3306_v51, %v2532_v49  ;;  %v3288_v60 = vld [vmem:[#allocation5 + $0x24] sm:$0xf0] }
  0x4f   : > { %1615 = vmatpush.bf16.msra.mxu3 %v2677_v38  ;;  %v3338_v55 = vld [vmem:[#allocation5 + $0x1b4] sm:$0xf0]  ;;  %v2597_v58 = vor.u32 %v3322_v53, %v2596_v52  ;;  %v2524_v61 = vld [vmem:[#allocation5 + $0xa0] sm:$0xf]  ;;  %v3304_v63 = vld [vmem:[#allocation5 + $0xa4] sm:$0xf0]  ;;  %v2461_v4 = vor.u32 %v3288_v60, %v2460_v59 }
  0x50   : > { %1559 = vmatpush.bf16.msra.mxu0 %v2477_v44  ;;  %v2661_v62 = vor.u32 %v3338_v55, %v2660_v54  ;;  %v2588_v0 = vld [vmem:[#allocation5 + $0x120] sm:$0xf]  ;;  %v3320_v1 = vld [vmem:[#allocation5 + $0x124] sm:$0xf0]  ;;  %v2525_v5 = vor.u32 %v3304_v63, %v2524_v61  ;;  %v2452_v7 = vld [vmem:[#allocation5 + $0x10] sm:$0xf] }
  0x51   : > { %1578 = vmatpush.bf16.msra.mxu1 %v2541_v45  ;;  %v2652_v2 = vld [vmem:[#allocation5 + $0x1a0] sm:$0xf]  ;;  %v3336_v3 = vld [vmem:[#allocation5 + $0x1a4] sm:$0xf0]  ;;  %v2589_v6 = vor.u32 %v3320_v1, %v2588_v0  ;;  %v3286_v8 = vld [vmem:[#allocation5 + $0x14] sm:$0xf0] }
  0x52   : > { %1597 = vmatpush.bf16.msra.mxu2 %v2605_v46  ;;  %v2516_v9 = vld [vmem:[#allocation5 + $0x90] sm:$0xf]  ;;  %v2653_v10 = vor.u32 %v3336_v3, %v2652_v2  ;;  %v3302_v11 = vld [vmem:[#allocation5 + $0x94] sm:$0xf0]  ;;  %v2444_v16 = vld [vmem:[#allocation5] sm:$0xf]  ;;  %v2453_v17 = vor.u32 %v3286_v8, %v2452_v7 }
  0x53   : > { %1616 = vmatpush.bf16.msra.mxu3 %v2669_v50  ;;  %v2580_v12 = vld [vmem:[#allocation5 + $0x110] sm:$0xf]  ;;  %v3318_v13 = vld [vmem:[#allocation5 + $0x114] sm:$0xf0]  ;;  %v3284_v18 = vld [vmem:[#allocation5 + $0x4] sm:$0xf0]  ;;  %v2517_v21 = vor.u32 %v3302_v11, %v2516_v9 }
  0x54   : > { %1560 = vmatpush.bf16.msra.mxu0 %v2469_v56  ;;  %v2644_v14 = vld [vmem:[#allocation5 + $0x190] sm:$0xf]  ;;  %v3334_v15 = vld [vmem:[#allocation5 + $0x194] sm:$0xf0]  ;;  %v2508_v19 = vld [vmem:[#allocation5 + $0x80] sm:$0xf]  ;;  %v2581_v22 = vor.u32 %v3318_v13, %v2580_v12  ;;  %v2445_v34 = vor.u32 %v3284_v18, %v2444_v16 }
  0x55   : > { %1579 = vmatpush.bf16.msra.mxu1 %v2533_v57  ;;  %v3300_v20 = vld [vmem:[#allocation5 + $0x84] sm:$0xf0]  ;;  %v2572_v23 = vld [vmem:[#allocation5 + $0x100] sm:$0xf]  ;;  %v2645_v26 = vor.u32 %v3334_v15, %v2644_v14  ;;  %v2884_v32 = vld [vmem:[#allocation5 + $0x370] sm:$0xf] }
  0x56   : > { %1598 = vmatpush.bf16.msra.mxu2 %v2597_v58  ;;  %v3316_v24 = vld [vmem:[#allocation5 + $0x104] sm:$0xf0]  ;;  %v2636_v25 = vld [vmem:[#allocation5 + $0x180] sm:$0xf]  ;;  %v3394_v33 = vld [vmem:[#allocation5 + $0x374] sm:$0xf0]  ;;  %v2509_v38 = vor.u32 %v3300_v20, %v2508_v19 }
  0x57   : > { %1617 = vmatpush.bf16.msra.mxu3 %v2661_v62  ;;  %v3332_v27 = vld [vmem:[#allocation5 + $0x184] sm:$0xf0]  ;;  %v367_v28 = vld [vmem:[%s4007_s1] sm:$0xff]  ;;  %v369_v35 = vld [vmem:[%s4007_s1 + $0x10] sm:$0xff]  ;;  %v2573_v39 = vor.u32 %v3316_v24, %v2572_v23  ;;  %v2885_v44 = vor.u32 %v3394_v33, %v2884_v32  ;;  %vm1549_vm0 = vcmask 523264   ;;  %s2441_s18 = sshll.u32 %s4003_s2, 4 }
  0x58   : > { %1561 = vmatpush.bf16.msra.mxu0 %v2461_v4  ;;  %v379_v29 = vld [vmem:[%s4007_s1 + $0x60] sm:$0xff]  ;;  %v368_v30 = vld [vmem:[%s4007_s1 + $0x8] sm:$0xff]  ;;  %v2820_v36 = vld [vmem:[#allocation5 + $0x2f0] sm:$0xf]  ;;  %v2637_v43 = vor.u32 %v3332_v27, %v2636_v25  ;;  %s363_s20 = scalar_lea.vmem [#allocation11], %s2441_s18  ;;  %s3491_s22 = sshll.u32 %s3910_s28, 4 }
  0x59   : > { %1580 = vmatpush.bf16.msra.mxu1 %v2525_v5  ;;  %v380_v31 = vld [vmem:[%s4007_s1 + $0x68] sm:$0xff]  ;;  %v3378_v37 = vld [vmem:[#allocation5 + $0x2f4] sm:$0xf0]  ;;  %v381_v40 = vld [vmem:[%s4007_s1 + $0x70] sm:$0xff]  ;;  %v4029_v48 = vpack.c.bf16 %v379_v29, %v367_v28  ;;  %s2311_s16 = scalar_lea.hbm %s4274_s7, %s3491_s22  ;;  %s2312_s23 = sshll.u32 %s363_s20, 4  ;;  %s2313_s23 = int_to_ptr.vmem [resolvable:$true] %s2312_s23 }
  0x5a   : > { %1599 = vmatpush.bf16.msra.mxu2 %v2589_v6  ;;  %v370_v41 = vld [vmem:[%s4007_s1 + $0x18] sm:$0xff]  ;;  %v2756_v45 = vld [vmem:[#allocation5 + $0x270] sm:$0xf]  ;;  %v2821_v49 = vor.u32 %v3378_v37, %v2820_v36  ;;  %v2876_v51 = vld [vmem:[#allocation5 + $0x360] sm:$0xf]  ;;  %v4031_v53 = vpack.c.bf16 %v380_v31, %v368_v30  ;;  %v4033_v54 = vpack.c.bf16 %v381_v40, %v369_v35  ;;  %s2314_s11 = sshll.u32 %s2311_s16, 4  ;;  %s2315_s11 = int_to_ptr.hbm [resolvable:$true] %s2314_s11 }
  0x5b   : > { %1618 = vmatpush.bf16.msra.mxu3 %v2653_v10  ;;  %v382_v42 = vld [vmem:[%s4007_s1 + $0x78] sm:$0xff]  ;;  %v2948_v47 = vld [vmem:[#allocation5 + $0x3f0] sm:$0xf]  ;;  %v3392_v52 = vld [vmem:[#allocation5 + $0x364] sm:$0xf0]  ;;  %s2300_s15 = scalar_lea.sflag [#allocation4], %s4003_s2 }
  0x5c   : > { %1562 = vmatpush.bf16.msra.mxu0 %v2453_v17  ;;  %v3362_v46 = vld [vmem:[#allocation5 + $0x274] sm:$0xf0]  ;;  %v2812_v55 = vld [vmem:[#allocation5 + $0x2e0] sm:$0xf]  ;;  %v3376_v56 = vld [vmem:[#allocation5 + $0x2e4] sm:$0xf0]  ;;  %v4035_v57 = vpack.c.bf16 %v382_v42, %v370_v41  ;;  %v2877_v60 = vor.u32 %v3392_v52, %v2876_v51 }
  0x5d   : > { %1581 = vmatpush.bf16.msra.mxu1 %v2517_v21  ;;  %v3410_v50 = vld [vmem:[#allocation5 + $0x3f4] sm:$0xf0]  ;;  %v2757_v58 = vor.u32 %v3362_v46, %v2756_v45  ;;  %v2748_v61 = vld [vmem:[#allocation5 + $0x260] sm:$0xf]  ;;  %v3360_v62 = vld [vmem:[#allocation5 + $0x264] sm:$0xf0]  ;;  %v2813_v0 = vor.u32 %v3376_v56, %v2812_v55 }
  0x5e   : > { %1600 = vmatpush.bf16.msra.mxu2 %v2581_v22  ;;  %v2949_v59 = vor.u32 %v3410_v50, %v2948_v47  ;;  %v2940_v63 = vld [vmem:[#allocation5 + $0x3e0] sm:$0xf]  ;;  %v3408_v1 = vld [vmem:[#allocation5 + $0x3e4] sm:$0xf0]  ;;  %v2868_v2 = vld [vmem:[#allocation5 + $0x350] sm:$0xf]  ;;  %v2749_v6 = vor.u32 %v3360_v62, %v2748_v61 }
  0x5f   : > { %1619 = vmatpush.bf16.msra.mxu3 %v2645_v26  ;;  %v3390_v3 = vld [vmem:[#allocation5 + $0x354] sm:$0xf0]  ;;  %v2804_v4 = vld [vmem:[#allocation5 + $0x2d0] sm:$0xf]  ;;  %v2941_v7 = vor.u32 %v3408_v1, %v2940_v63  ;;  %v2860_v14 = vld [vmem:[#allocation5 + $0x340] sm:$0xf] }
  0x60   : > { %1563 = vmatpush.bf16.msra.mxu0 %v2445_v34  ;;  %v3374_v5 = vld [vmem:[#allocation5 + $0x2d4] sm:$0xf0]  ;;  %v2869_v8 = vor.u32 %v3390_v3, %v2868_v2  ;;  %v2740_v9 = vld [vmem:[#allocation5 + $0x250] sm:$0xf]  ;;  %v3388_v15 = vld [vmem:[#allocation5 + $0x344] sm:$0xf0] }
  0x61   : > { %1582 = vmatpush.bf16.msra.mxu1 %v2509_v38  ;;  %v3358_v10 = vld [vmem:[#allocation5 + $0x254] sm:$0xf0]  ;;  %v2932_v11 = vld [vmem:[#allocation5 + $0x3d0] sm:$0xf]  ;;  %v2805_v12 = vor.u32 %v3374_v5, %v2804_v4  ;;  %v2796_v16 = vld [vmem:[#allocation5 + $0x2c0] sm:$0xf]  ;;  %v2861_v23 = vor.u32 %v3388_v15, %v2860_v14 }
  0x62   : > { %1601 = vmatpush.bf16.msra.mxu2 %v2573_v39  ;;  %v3406_v13 = vld [vmem:[#allocation5 + $0x3d4] sm:$0xf0]  ;;  %v3372_v17 = vld [vmem:[#allocation5 + $0x2c4] sm:$0xf0]  ;;  %v2741_v18 = vor.u32 %v3358_v10, %v2740_v9  ;;  %v2732_v19 = vld [vmem:[#allocation5 + $0x240] sm:$0xf] }
  0x63   : > { %1620 = vmatpush.bf16.msra.mxu3 %v2637_v43  ;;  %1564 = vmatmul.bf16.vlgmr.msra.gmra.mxu0 %v4029_v48  ;;  %v3356_v20 = vld [vmem:[#allocation5 + $0x244] sm:$0xf0]  ;;  %v2924_v21 = vld [vmem:[#allocation5 + $0x3c0] sm:$0xf]  ;;  %v2933_v22 = vor.u32 %v3406_v13, %v2932_v11  ;;  %v2797_v27 = vor.u32 %v3372_v17, %v2796_v16  ;;  %v2852_v30 = vld [vmem:[#allocation5 + $0x330] sm:$0xf] }
  0x64   : > { %1583 = vmatmul.bf16.vlgmr.msra.gmra.mxu1 %v4031_v53  ;;  %1632 = vmatpush.bf16.msrb.mxu0 %v2757_v58  ;;  %v3404_v24 = vld [vmem:[#allocation5 + $0x3c4] sm:$0xf0]  ;;  %v391_v25 = vld [vmem:[%s4007_s1 + $0xc0] sm:$0xff]  ;;  %v3386_v31 = vld [vmem:[#allocation5 + $0x334] sm:$0xf0]  ;;  %v2733_v35 = vor.u32 %v3356_v20, %v2732_v19  ;;  %s3775_s3 = sshra.s32 %s2315_s11, 4  ;;  %s3776_s3 = int_to_ptr.hbm [resolvable:$true] %s3775_s3 }
  0x65   : > { %1651 = vmatpush.bf16.msrb.mxu1 %v2821_v49  ;;  %1602 = vmatmul.bf16.vlgmr.msra.gmra.mxu2 %v4033_v54  ;;  %v403_v26 = vld [vmem:[%s4007_s1 + $0x120] sm:$0xff]  ;;  %v392_v28 = vld [vmem:[%s4007_s1 + $0xc8] sm:$0xff]  ;;  %v393_v32 = vld [vmem:[%s4007_s1 + $0xd0] sm:$0xff]  ;;  %v2925_v39 = vor.u32 %v3404_v24, %v2924_v21  ;;  %v2853_v40 = vor.u32 %v3386_v31, %v2852_v30  ;;  %s3777_s28 = scalar_lea.hbm %s3776_s3, 16  ;;  %s3781_s30 = scalar_lea.hbm %s4274_s7, 32 }
  0x66   : > { %1670 = vmatpush.bf16.msrb.mxu2 %v2885_v44  ;;  %1621 = vmatmul.bf16.vlgmr.msra.gmra.mxu3 %v4035_v57  ;;  %v404_v29 = vld [vmem:[%s4007_s1 + $0x128] sm:$0xff]  ;;  %v2788_v33 = vld [vmem:[#allocation5 + $0x2b0] sm:$0xf]  ;;  %v3370_v34 = vld [vmem:[#allocation5 + $0x2b4] sm:$0xf0]  ;;  %v4049_v44 = vpack.c.bf16 %v403_v26, %v391_v25  ;;  %p3778_p1 = scmp.ne.s32.totalorder %s3776_s3, %s3777_s28  ;;  %p3782_p11 = scmp.lt.s32.totalorder %s3776_s3, %s4274_s7 }
  0x67   : > { %1689 = vmatpush.bf16.msrb.mxu3 %v2949_v59  ;;  %v405_v36 = vld [vmem:[%s4007_s1 + $0x130] sm:$0xff]  ;;  %v394_v37 = vld [vmem:[%s4007_s1 + $0xd8] sm:$0xff]  ;;  %v2789_v45 = vor.u32 %v3370_v34, %v2788_v33  ;;  %v2844_v47 = vld [vmem:[#allocation5 + $0x320] sm:$0xf]  ;;  %v4051_v50 = vpack.c.bf16 %v404_v29, %v392_v28  ;;  %p3783_p9 = scmp.lt.s32.totalorder %s3781_s30, %s3777_s28 }
  0x68   : > { %1633 = vmatpush.bf16.msrb.mxu0 %v2749_v6  ;;  %v406_v38 = vld [vmem:[%s4007_s1 + $0x138] sm:$0xff]  ;;  %v2724_v41 = vld [vmem:[#allocation5 + $0x230] sm:$0xf]  ;;  %v3384_v49 = vld [vmem:[#allocation5 + $0x324] sm:$0xf0]  ;;  %v4053_v51 = vpack.c.bf16 %v405_v36, %v393_v32  ;;  %p3779_p4 = pnand %p3778_p1, %p3973_p3 }
  0x69   : > { %1652 = vmatpush.bf16.msrb.mxu1 %v2813_v0  ;;  %v3354_v42 = vld [vmem:[#allocation5 + $0x234] sm:$0xf0]  ;;  %v2916_v43 = vld [vmem:[#allocation5 + $0x3b0] sm:$0xf]  ;;  %v2780_v52 = vld [vmem:[#allocation5 + $0x2a0] sm:$0xf]  ;;  %v4055_v56 = vpack.c.bf16 %v406_v38, %v394_v37  ;;  %p3784_p2 = por %p3783_p9, %p3782_p11 }
  0x6a   : > { %1671 = vmatpush.bf16.msrb.mxu2 %v2877_v60  ;;  %v3402_v46 = vld [vmem:[#allocation5 + $0x3b4] sm:$0xf0]  ;;  %v3368_v55 = vld [vmem:[#allocation5 + $0x2a4] sm:$0xf0]  ;;  %v2725_v58 = vor.u32 %v3354_v42, %v2724_v41  ;;  %v2845_v60 = vor.u32 %v3384_v49, %v2844_v47  ;;  %v2716_v61 = vld [vmem:[#allocation5 + $0x220] sm:$0xf]  ;;  %p3780_p8 = pneg %p3779_p4 }
  0x6b   : > { %1690 = vmatpush.bf16.msrb.mxu3 %v2941_v7  ;;  %v2917_v59 = vor.u32 %v3402_v46, %v2916_v43  ;;  %v3352_v62 = vld [vmem:[#allocation5 + $0x224] sm:$0xf0]  ;;  %v2908_v63 = vld [vmem:[#allocation5 + $0x3a0] sm:$0xf]  ;;  %v2781_v0 = vor.u32 %v3368_v55, %v2780_v52  ;;  %v2836_v2 = vld [vmem:[#allocation5 + $0x310] sm:$0xf] }
  0x6c   : > { %1634 = vmatpush.bf16.msrb.mxu0 %v2741_v18  ;;  %v3400_v1 = vld [vmem:[#allocation5 + $0x3a4] sm:$0xf0]  ;;  %v3382_v3 = vld [vmem:[#allocation5 + $0x314] sm:$0xf0]  ;;  %v2772_v4 = vld [vmem:[#allocation5 + $0x290] sm:$0xf]  ;;  %v2717_v6 = vor.u32 %v3352_v62, %v2716_v61  ;;  %p3785_p10 = pnand %p3784_p2, %p3780_p8 }
  0x6d   : > { %1653 = vmatpush.bf16.msrb.mxu1 %v2805_v12  ;;  %v3366_v5 = vld [vmem:[#allocation5 + $0x294] sm:$0xf0]  ;;  %v2708_v7 = vld [vmem:[#allocation5 + $0x210] sm:$0xf]  ;;  %v2837_v9 = vor.u32 %v3382_v3, %v2836_v2  ;;  %v2828_v14 = vld [vmem:[#allocation5 + $0x300] sm:$0xf] }
  0x6e   : > { %1672 = vmatpush.bf16.msrb.mxu2 %v2869_v8  ;;  %v2909_v8 = vor.u32 %v3400_v1, %v2908_v63  ;;  %v3350_v10 = vld [vmem:[#allocation5 + $0x214] sm:$0xf0]  ;;  %v2900_v11 = vld [vmem:[#allocation5 + $0x390] sm:$0xf]  ;;  %v2773_v13 = vor.u32 %v3366_v5, %v2772_v4  ;;  %v3380_v15 = vld [vmem:[#allocation5 + $0x304] sm:$0xf0] }
  0x6f   : > { %1691 = vmatpush.bf16.msrb.mxu3 %v2933_v22  ;;  %v3398_v12 = vld [vmem:[#allocation5 + $0x394] sm:$0xf0]  ;;  %v2764_v16 = vld [vmem:[#allocation5 + $0x280] sm:$0xf]  ;;  %v3364_v17 = vld [vmem:[#allocation5 + $0x284] sm:$0xf0]  ;;  %v2709_v20 = vor.u32 %v3350_v10, %v2708_v7  ;;  %v2829_v25 = vor.u32 %v3380_v15, %v2828_v14 }
  0x70   : > { %1635 = vmatpush.bf16.msrb.mxu0 %v2733_v35  ;;  %v3140_v18 = vld [vmem:[#allocation5 + $0x570] sm:$0xf]  ;;  %v3458_v19 = vld [vmem:[#allocation5 + $0x574] sm:$0xf0]  ;;  %v2700_v21 = vld [vmem:[#allocation5 + $0x200] sm:$0xf]  ;;  %v2901_v24 = vor.u32 %v3398_v12, %v2900_v11  ;;  %v2765_v29 = vor.u32 %v3364_v17, %v2764_v16 }
  0x71   : > { %1654 = vmatpush.bf16.msrb.mxu1 %v2797_v27  ;;  %v3076_v22 = vld [vmem:[#allocation5 + $0x4f0] sm:$0xf]  ;;  %v3348_v26 = vld [vmem:[#allocation5 + $0x204] sm:$0xf0]  ;;  %v2892_v27 = vld [vmem:[#allocation5 + $0x380] sm:$0xf]  ;;  %v3141_v34 = vor.u32 %v3458_v19, %v3140_v18 }
  0x72   : > { %1673 = vmatpush.bf16.msrb.mxu2 %v2861_v23  ;;  %v3442_v23 = vld [vmem:[#allocation5 + $0x4f4] sm:$0xf0]  ;;  %v3396_v28 = vld [vmem:[#allocation5 + $0x384] sm:$0xf0]  ;;  %v371_v30 = vld [vmem:[%s4007_s1 + $0x20] sm:$0xff]  ;;  %v2701_v42 = vor.u32 %v3348_v26, %v2700_v21 }
  0x73   : > { %1692 = vmatpush.bf16.msrb.mxu3 %v2925_v39  ;;  %1569 = vmatmul.bf16.gmra.mxu0 %v4049_v44  ;;  %v383_v31 = vld [vmem:[%s4007_s1 + $0x80] sm:$0xff]  ;;  %v372_v32 = vld [vmem:[%s4007_s1 + $0x28] sm:$0xff]  ;;  %v3012_v35 = vld [vmem:[#allocation5 + $0x470] sm:$0xf]  ;;  %v3077_v38 = vor.u32 %v3442_v23, %v3076_v22  ;;  %v2893_v47 = vor.u32 %v3396_v28, %v2892_v27 }
  0x74   : > { %1588 = vmatmul.bf16.gmra.mxu1 %v4051_v50  ;;  %1636 = vmatpush.bf16.msrb.mxu0 %v2725_v58  ;;  %v384_v33 = vld [vmem:[%s4007_s1 + $0x88] sm:$0xff]  ;;  %v3426_v36 = vld [vmem:[#allocation5 + $0x474] sm:$0xf0]  ;;  %v3172_v37 = vld [vmem:[#allocation5 + $0x5b0] sm:$0xf] }
  0x75   : > { %1655 = vmatpush.bf16.msrb.mxu1 %v2789_v45  ;;  %1607 = vmatmul.bf16.gmra.mxu2 %v4053_v51  ;;  %v3466_v39 = vld [vmem:[#allocation5 + $0x5b4] sm:$0xf0]  ;;  %v3456_v41 = vld [vmem:[#allocation5 + $0x564] sm:$0xf0]  ;;  %v373_v43 = vld [vmem:[%s4007_s1 + $0x30] sm:$0xff]  ;;  %v3013_v52 = vor.u32 %v3426_v36, %v3012_v35  ;;  %v4071_v1 = vpack.c.bf16 %v384_v33, %v372_v32 }
  0x76   : > { %1674 = vmatpush.bf16.msrb.mxu2 %v2853_v40  ;;  %1626 = vmatmul.bf16.gmra.mxu3 %v4055_v56  ;;  %v3132_v40 = vld [vmem:[#allocation5 + $0x560] sm:$0xf]  ;;  %v385_v45 = vld [vmem:[%s4007_s1 + $0x90] sm:$0xff]  ;;  %v374_v46 = vld [vmem:[%s4007_s1 + $0x38] sm:$0xff] }
  0x77   : > { %1693 = vmatpush.bf16.msrb.mxu3 %v2917_v59  ;;  %v386_v49 = vld [vmem:[%s4007_s1 + $0x98] sm:$0xff]  ;;  %v3004_v55 = vld [vmem:[#allocation5 + $0x460] sm:$0xf]  ;;  %v3424_v58 = vld [vmem:[#allocation5 + $0x464] sm:$0xf0]  ;;  %v3173_v59 = vor.u32 %v3466_v39, %v3172_v37  ;;  %v4073_v5 = vpack.c.bf16 %v385_v45, %v373_v43 }
  0x78   : > { %1637 = vmatpush.bf16.msrb.mxu0 %v2717_v6  ;;  %v3068_v61 = vld [vmem:[#allocation5 + $0x4e0] sm:$0xf]  ;;  %v3440_v62 = vld [vmem:[#allocation5 + $0x4e4] sm:$0xf0]  ;;  %v3124_v63 = vld [vmem:[#allocation5 + $0x550] sm:$0xf]  ;;  %v4075_v6 = vpack.c.bf16 %v386_v49, %v374_v46  ;;  %v3005_v7 = vor.u32 %v3424_v58, %v3004_v55 }
  0x79   : > { %1656 = vmatpush.bf16.msrb.mxu1 %v2781_v0  ;;  %v4069_v0 = vpack.c.bf16 %v383_v31, %v371_v30  ;;  %v3454_v2 = vld [vmem:[#allocation5 + $0x554] sm:$0xf0]  ;;  %v3164_v3 = vld [vmem:[#allocation5 + $0x5a0] sm:$0xf]  ;;  %v3464_v4 = vld [vmem:[#allocation5 + $0x5a4] sm:$0xf0] }
  0x7a   : > { %1675 = vmatpush.bf16.msrb.mxu2 %v2845_v60  ;;  %v3133_v60 = vor.u32 %v3456_v41, %v3132_v40  ;;  %v3422_v10 = vld [vmem:[#allocation5 + $0x454] sm:$0xf0]  ;;  %v3125_v11 = vor.u32 %v3454_v2, %v3124_v63  ;;  %v3060_v12 = vld [vmem:[#allocation5 + $0x4d0] sm:$0xf]  ;;  %v3165_v14 = vor.u32 %v3464_v4, %v3164_v3  ;;  %v3116_v15 = vld [vmem:[#allocation5 + $0x540] sm:$0xf] }
  0x7b   : > { %1694 = vmatpush.bf16.msrb.mxu3 %v2909_v8  ;;  %v3069_v8 = vor.u32 %v3440_v62, %v3068_v61  ;;  %v3452_v16 = vld [vmem:[#allocation5 + $0x544] sm:$0xf0]  ;;  %v3156_v17 = vld [vmem:[#allocation5 + $0x590] sm:$0xf]  ;;  %v3462_v18 = vld [vmem:[#allocation5 + $0x594] sm:$0xf0] }
  0x7c   : > { %1638 = vmatpush.bf16.msrb.mxu0 %v2709_v20  ;;  %v2988_v21 = vld [vmem:[#allocation5 + $0x440] sm:$0xf]  ;;  %v3420_v22 = vld [vmem:[#allocation5 + $0x444] sm:$0xf0]  ;;  %v3117_v23 = vor.u32 %v3452_v16, %v3116_v15  ;;  %v3108_v26 = vld [vmem:[#allocation5 + $0x530] sm:$0xf]  ;;  %v3157_v27 = vor.u32 %v3462_v18, %v3156_v17 }
  0x7d   : > { %1657 = vmatpush.bf16.msrb.mxu1 %v2773_v13  ;;  %v3438_v13 = vld [vmem:[#allocation5 + $0x4d4] sm:$0xf0]  ;;  %v3460_v30 = vld [vmem:[#allocation5 + $0x584] sm:$0xf0]  ;;  %v2989_v31 = vor.u32 %v3420_v22, %v2988_v21  ;;  %v2980_v33 = vld [vmem:[#allocation5 + $0x430] sm:$0xf] }
  0x7e   : > { %1676 = vmatpush.bf16.msrb.mxu2 %v2837_v9  ;;  %v2996_v9 = vld [vmem:[#allocation5 + $0x450] sm:$0xf]  ;;  %v3061_v20 = vor.u32 %v3438_v13, %v3060_v12  ;;  %v3450_v28 = vld [vmem:[#allocation5 + $0x534] sm:$0xf0]  ;;  %v407_v35 = vld [vmem:[%s4007_s1 + $0x140] sm:$0xff] }
  0x7f   : > { %1695 = vmatpush.bf16.msrb.mxu3 %v2901_v24  ;;  %v2997_v19 = vor.u32 %v3422_v10, %v2996_v9  ;;  %v3052_v24 = vld [vmem:[#allocation5 + $0x4c0] sm:$0xf]  ;;  %v396_v36 = vld [vmem:[%s4007_s1 + $0xe8] sm:$0xff]  ;;  %v3418_v39 = vld [vmem:[#allocation5 + $0x434] sm:$0xf0] }
  0x80   : > { %1639 = vmatpush.bf16.msrb.mxu0 %v2701_v42  ;;  %v408_v37 = vld [vmem:[%s4007_s1 + $0x148] sm:$0xff]  ;;  %v3044_v40 = vld [vmem:[#allocation5 + $0x4b0] sm:$0xf]  ;;  %v3434_v41 = vld [vmem:[#allocation5 + $0x4b4] sm:$0xf0]  ;;  %v2981_v58 = vor.u32 %v3418_v39, %v2980_v33 }
  0x81   : > { %1658 = vmatpush.bf16.msrb.mxu1 %v2765_v29  ;;  %v3148_v29 = vld [vmem:[#allocation5 + $0x580] sm:$0xf]  ;;  %v397_v43 = vld [vmem:[%s4007_s1 + $0xf0] sm:$0xff]  ;;  %v398_v49 = vld [vmem:[%s4007_s1 + $0xf8] sm:$0xff]  ;;  %v4091_v9 = vpack.c.bf16 %v408_v37, %v396_v36 }
  0x82   : > { %1677 = vmatpush.bf16.msrb.mxu2 %v2829_v25  ;;  %v3436_v25 = vld [vmem:[#allocation5 + $0x4c4] sm:$0xf0]  ;;  %v3149_v42 = vor.u32 %v3460_v30, %v3148_v29  ;;  %v409_v45 = vld [vmem:[%s4007_s1 + $0x150] sm:$0xff]  ;;  %v3100_v46 = vld [vmem:[#allocation5 + $0x520] sm:$0xf] }
  0x83   : > { %1696 = vmatpush.bf16.msrb.mxu3 %v2893_v47  ;;  %1640 = vmatmul.bf16.vlgmr.msrb.gmra.mxu0 %v4069_v0  ;;  %v3053_v32 = vor.u32 %v3436_v25, %v3052_v24  ;;  %v3448_v47 = vld [vmem:[#allocation5 + $0x524] sm:$0xf0]  ;;  %v3345_v55 = vld [vmem:[#allocation5 + $0x1f4] sm:$0xf]  ;;  %v2694_v62 = vld [vmem:[#allocation5 + $0x1f8] sm:$0xf0]  ;;  %v4093_v13 = vpack.c.bf16 %v409_v45, %v397_v43 }
  0x84   : > { %1708 = vmatpush.bf16.msra.mxu0 %v3013_v52  ;;  %1659 = vmatmul.bf16.vlgmr.msrb.gmra.mxu1 %v4071_v1  ;;  %v410_v52 = vld [vmem:[%s4007_s1 + $0x158] sm:$0xff]  ;;  %v3416_v61 = vld [vmem:[#allocation5 + $0x424] sm:$0xf0]  ;;  %v3101_v63 = vor.u32 %v3448_v47, %v3100_v46  ;;  %v3036_v2 = vld [vmem:[#allocation5 + $0x4a0] sm:$0xf] }
  0x85   : > { %1727 = vmatpush.bf16.msra.mxu1 %v3077_v38  ;;  %1678 = vmatmul.bf16.vlgmr.msrb.gmra.mxu2 %v4073_v5  ;;  %v3109_v38 = vor.u32 %v3450_v28, %v3108_v26  ;;  %v3432_v3 = vld [vmem:[#allocation5 + $0x4a4] sm:$0xf0]  ;;  %v3092_v4 = vld [vmem:[#allocation5 + $0x510] sm:$0xf]  ;;  %v3446_v10 = vld [vmem:[#allocation5 + $0x514] sm:$0xf0] }
  0x86   : > { %1746 = vmatpush.bf16.msra.mxu2 %v3141_v34  ;;  %1697 = vmatmul.bf16.vlgmr.msrb.gmra.mxu3 %v4075_v6  ;;  %v395_v34 = vld [vmem:[%s4007_s1 + $0xe0] sm:$0xff]  ;;  %v2686_v12 = vld [vmem:[#allocation5 + $0x1e8] sm:$0xf0]  ;;  %v3037_v16 = vor.u32 %v3432_v3, %v3036_v2  ;;  %v2964_v17 = vld [vmem:[#allocation5 + $0x410] sm:$0xf] }
  0x87   : > { %1769 = vmatpush.bf16.msra.mxu3 %v3173_v59  ;;  %v3045_v59 = vor.u32 %v3434_v41, %v3044_v40  ;;  %v3414_v18 = vld [vmem:[#allocation5 + $0x414] sm:$0xf0]  ;;  %v3084_v22 = vld [vmem:[#allocation5 + $0x500] sm:$0xf]  ;;  %v3444_v24 = vld [vmem:[#allocation5 + $0x504] sm:$0xf0] }
  0x88   : > { %1709 = vmatpush.bf16.msra.mxu0 %v3005_v7  ;;  %v2697_v7 = vor.u32 %v3345_v55, %v2694_v62  ;;  %v3430_v21 = vld [vmem:[#allocation5 + $0x494] sm:$0xf0]  ;;  %v3341_v25 = vld [vmem:[#allocation5 + $0x1d4] sm:$0xf]  ;;  %v2678_v26 = vld [vmem:[#allocation5 + $0x1d8] sm:$0xf0]  ;;  %v2965_v29 = vor.u32 %v3414_v18, %v2964_v17 }
  0x89   : > { %1728 = vmatpush.bf16.msra.mxu1 %v3069_v8  ;;  %v4089_v8 = vpack.c.bf16 %v407_v35, %v395_v34  ;;  %v2630_v28 = vld [vmem:[#allocation5 + $0x178] sm:$0xf0]  ;;  %v3020_v33 = vld [vmem:[#allocation5 + $0x480] sm:$0xf]  ;;  %v3085_v34 = vor.u32 %v3444_v24, %v3084_v22  ;;  %v3428_v35 = vld [vmem:[#allocation5 + $0x484] sm:$0xf0] }
  0x8a   : > { %1747 = vmatpush.bf16.msra.mxu2 %v3133_v60  ;;  %v2972_v60 = vld [vmem:[#allocation5 + $0x420] sm:$0xf]  ;;  %v3297_v36 = vld [vmem:[#allocation5 + $0x74] sm:$0xf]  ;;  %v2502_v37 = vld [vmem:[#allocation5 + $0x78] sm:$0xf0] }
  0x8b   : > { %1770 = vmatpush.bf16.msra.mxu3 %v3165_v14  ;;  %v4095_v14 = vpack.c.bf16 %v410_v52, %v398_v49  ;;  %v2973_v15 = vor.u32 %v3416_v61, %v2972_v60  ;;  %v3313_v40 = vld [vmem:[#allocation5 + $0xf4] sm:$0xf]  ;;  %v2566_v41 = vld [vmem:[#allocation5 + $0xf8] sm:$0xf0]  ;;  %v2622_v43 = vld [vmem:[#allocation5 + $0x168] sm:$0xf0]  ;;  %v3021_v49 = vor.u32 %v3428_v35, %v3020_v33  ;;  %v2505_v60 = vor.u32 %v3297_v36, %v2502_v37 }
  0x8c   : > { %1710 = vmatpush.bf16.msra.mxu0 %v2997_v19  ;;  %v3093_v19 = vor.u32 %v3446_v10, %v3092_v4  ;;  %v3339_v45 = vld [vmem:[#allocation5 + $0x1c4] sm:$0xf]  ;;  %v2670_v46 = vld [vmem:[#allocation5 + $0x1c8] sm:$0xf0]  ;;  %v2569_v61 = vor.u32 %v3313_v40, %v2566_v41  ;;  %v377_v10 = vld [vmem:[%s4007_s1 + $0x50] sm:$0xff] }
  0x8d   : > { %1729 = vmatpush.bf16.msra.mxu1 %v3061_v20  ;;  %v3028_v20 = vld [vmem:[#allocation5 + $0x490] sm:$0xf]  ;;  %v375_v52 = vld [vmem:[%s4007_s1 + $0x40] sm:$0xff]  ;;  %v2494_v2 = vld [vmem:[#allocation5 + $0x68] sm:$0xf0] }
  0x8e   : > { %1748 = vmatpush.bf16.msra.mxu2 %v3125_v11  ;;  %v3343_v11 = vld [vmem:[#allocation5 + $0x1e4] sm:$0xf]  ;;  %v3029_v30 = vor.u32 %v3430_v21, %v3028_v20  ;;  %v2558_v4 = vld [vmem:[#allocation5 + $0xe8] sm:$0xf0]  ;;  %v2614_v17 = vld [vmem:[#allocation5 + $0x158] sm:$0xf0] }
  0x8f   : > { %1771 = vmatpush.bf16.msra.mxu3 %v3157_v27  ;;  %v3329_v27 = vld [vmem:[#allocation5 + $0x174] sm:$0xf]  ;;  %v387_v55 = vld [vmem:[%s4007_s1 + $0xa0] sm:$0xff]  ;;  %v2662_v22 = vld [vmem:[#allocation5 + $0x1b8] sm:$0xf0] }
  0x90   : > { %1711 = vmatpush.bf16.msra.mxu0 %v2989_v31  ;;  %v2956_v31 = vld [vmem:[#allocation5 + $0x400] sm:$0xf]  ;;  %v2633_v39 = vor.u32 %v3329_v27, %v2630_v28  ;;  %v3295_v62 = vld [vmem:[#allocation5 + $0x64] sm:$0xf]  ;;  %v3293_v20 = vld [vmem:[#allocation5 + $0x54] sm:$0xf] }
  0x91   : > { %1730 = vmatpush.bf16.msra.mxu1 %v3053_v32  ;;  %v3412_v32 = vld [vmem:[#allocation5 + $0x404] sm:$0xf0]  ;;  %v3311_v3 = vld [vmem:[#allocation5 + $0xe4] sm:$0xf]  ;;  %v2497_v18 = vor.u32 %v3295_v62, %v2494_v2  ;;  %v3337_v21 = vld [vmem:[#allocation5 + $0x1b4] sm:$0xf] }
  0x92   : > { %1749 = vmatpush.bf16.msra.mxu2 %v3117_v23  ;;  %v2689_v23 = vor.u32 %v3343_v11, %v2686_v12  ;;  %v2957_v47 = vor.u32 %v3412_v32, %v2956_v31  ;;  %v389_v11 = vld [vmem:[%s4007_s1 + $0xb0] sm:$0xff]  ;;  %v378_v12 = vld [vmem:[%s4007_s1 + $0x58] sm:$0xff]  ;;  %v3323_v31 = vld [vmem:[#allocation5 + $0x144] sm:$0xf]  ;;  %v2665_v33 = vor.u32 %v3337_v21, %v2662_v22 }
  0x93   : > { %1772 = vmatpush.bf16.msra.mxu3 %v3149_v42  ;;  %1645 = vmatmul.bf16.gmra.mxu0 %v4089_v8  ;;  %v3327_v42 = vld [vmem:[#allocation5 + $0x164] sm:$0xf]  ;;  %v2550_v27 = vld [vmem:[#allocation5 + $0xd8] sm:$0xf0]  ;;  %v4113_v28 = vpack.c.bf16 %v389_v11, %v377_v10  ;;  %v2606_v32 = vld [vmem:[#allocation5 + $0x148] sm:$0xf0] }
  0x94   : > { %1712 = vmatpush.bf16.msra.mxu0 %v2981_v58  ;;  %1664 = vmatmul.bf16.gmra.mxu1 %v4091_v9  ;;  %v376_v58 = vld [vmem:[%s4007_s1 + $0x48] sm:$0xff]  ;;  %v3291_v36 = vld [vmem:[#allocation5 + $0x44] sm:$0xf] }
  0x95   : > { %1731 = vmatpush.bf16.msra.mxu1 %v3045_v59  ;;  %1683 = vmatmul.bf16.gmra.mxu2 %v4093_v13  ;;  %v388_v59 = vld [vmem:[%s4007_s1 + $0xa8] sm:$0xff]  ;;  %v3335_v37 = vld [vmem:[#allocation5 + $0x1a4] sm:$0xf] }
  0x96   : > { %1750 = vmatpush.bf16.msra.mxu2 %v3109_v38  ;;  %1702 = vmatmul.bf16.gmra.mxu3 %v4095_v14  ;;  %v2681_v38 = vor.u32 %v3341_v25, %v2678_v26  ;;  %v4111_v24 = vpack.c.bf16 %v388_v59, %v376_v58  ;;  %v2486_v25 = vld [vmem:[#allocation5 + $0x58] sm:$0xf0]  ;;  %v3309_v26 = vld [vmem:[#allocation5 + $0xd4] sm:$0xf]  ;;  %v3307_v40 = vld [vmem:[#allocation5 + $0xc4] sm:$0xf] }
  0x97   : > { %1841 = vmatpush.bf16.msrb.mxu3 %v2697_v7  ;;  %v2673_v7 = vor.u32 %v3339_v45, %v2670_v46  ;;  %v2553_v35 = vor.u32 %v3309_v26, %v2550_v27  ;;  %v2542_v41 = vld [vmem:[#allocation5 + $0xc8] sm:$0xf0]  ;;  %v2598_v45 = vld [vmem:[#allocation5 + $0x138] sm:$0xf0]  ;;  %v3303_v22 = vld [vmem:[#allocation5 + $0xa4] sm:$0xf] }
  0x98   : > { %1713 = vmatpush.bf16.msra.mxu0 %v2973_v15  ;;  %v390_v15 = vld [vmem:[%s4007_s1 + $0xb8] sm:$0xff]  ;;  %v2590_v2 = vld [vmem:[#allocation5 + $0x128] sm:$0xf0] }
  0x99   : > { %1732 = vmatpush.bf16.msra.mxu1 %v3037_v16  ;;  %v3325_v16 = vld [vmem:[#allocation5 + $0x154] sm:$0xf]  ;;  %v2646_v58 = vld [vmem:[#allocation5 + $0x198] sm:$0xf0]  ;;  %v400_v10 = vld [vmem:[%s4007_s1 + $0x108] sm:$0xff] }
  0x9a   : > { %1751 = vmatpush.bf16.msra.mxu2 %v3101_v63  ;;  %v2625_v63 = vor.u32 %v3327_v42, %v2622_v43  ;;  %v2609_v42 = vor.u32 %v3323_v31, %v2606_v32  ;;  %v3321_v43 = vld [vmem:[#allocation5 + $0x134] sm:$0xf]  ;;  %v2470_v59 = vld [vmem:[#allocation5 + $0x38] sm:$0xf0]  ;;  %v412_v11 = vld [vmem:[%s4007_s1 + $0x168] sm:$0xff] }
  0x9b   : > { %1842 = vmatpush.bf16.msrb.mxu3 %v2689_v23  ;;  %v4109_v23 = vpack.c.bf16 %v387_v55, %v375_v52  ;;  %v3289_v52 = vld [vmem:[#allocation5 + $0x34] sm:$0xf]  ;;  %v2601_v62 = vor.u32 %v3321_v43, %v2598_v45  ;;  %v2462_v21 = vld [vmem:[#allocation5 + $0x28] sm:$0xf0]  ;;  %v402_v26 = vld [vmem:[%s4007_s1 + $0x118] sm:$0xff] }
  0x9c   : > { %1714 = vmatpush.bf16.msra.mxu0 %v2965_v29  ;;  %v4115_v29 = vpack.c.bf16 %v390_v15, %v378_v12  ;;  %v3333_v55 = vld [vmem:[#allocation5 + $0x194] sm:$0xf]  ;;  %v2473_v12 = vor.u32 %v3289_v52, %v2470_v59  ;;  %v414_v27 = vld [vmem:[%s4007_s1 + $0x178] sm:$0xff]  ;;  %v2574_v52 = vld [vmem:[#allocation5 + $0x108] sm:$0xf0] }
  0x9d   : > { %1733 = vmatpush.bf16.msra.mxu1 %v3029_v30  ;;  %v2617_v30 = vor.u32 %v3325_v16, %v2614_v17  ;;  %v3287_v16 = vld [vmem:[#allocation5 + $0x24] sm:$0xf]  ;;  %v2582_v32 = vld [vmem:[#allocation5 + $0x118] sm:$0xf0] }
  0x9e   : > { %1752 = vmatpush.bf16.msra.mxu2 %v3093_v19  ;;  %v2561_v19 = vor.u32 %v3311_v3, %v2558_v4  ;;  %v2649_v3 = vor.u32 %v3333_v55, %v2646_v58  ;;  %v399_v4 = vld [vmem:[%s4007_s1 + $0x100] sm:$0xff]  ;;  %v2518_v43 = vld [vmem:[#allocation5 + $0x98] sm:$0xf0] }
  0x9f   : > { %1843 = vmatpush.bf16.msrb.mxu3 %v2681_v38  ;;  %v2654_v38 = vld [vmem:[#allocation5 + $0x1a8] sm:$0xf0]  ;;  %v3331_v17 = vld [vmem:[#allocation5 + $0x184] sm:$0xf] }
  0xa0   : > { %1715 = vmatpush.bf16.msra.mxu0 %v2957_v47  ;;  %v2657_v46 = vor.u32 %v3335_v37, %v2654_v38  ;;  %v3409_v37 = vld [vmem:[#allocation5 + $0x3f4] sm:$0xf]  ;;  %v2950_v38 = vld [vmem:[#allocation5 + $0x3f8] sm:$0xf0]  ;;  %v3283_v55 = vld [vmem:[#allocation5 + $0x4] sm:$0xf] }
  0xa1   : > { %1734 = vmatpush.bf16.msra.mxu1 %v3021_v49  ;;  %v2545_v49 = vor.u32 %v3307_v40, %v2542_v41  ;;  %v4132_v40 = vpack.c.bf16 %v412_v11, %v400_v10  ;;  %v2454_v41 = vld [vmem:[#allocation5 + $0x18] sm:$0xf0]  ;;  %v2953_v58 = vor.u32 %v3409_v37, %v2950_v38  ;;  %v3361_v10 = vld [vmem:[#allocation5 + $0x274] sm:$0xf]  ;;  %v2926_v37 = vld [vmem:[#allocation5 + $0x3c8] sm:$0xf0] }
  0xa2   : > { %1753 = vmatpush.bf16.msra.mxu2 %v3085_v34  ;;  %v2489_v34 = vor.u32 %v3293_v20, %v2486_v25  ;;  %v413_v20 = vld [vmem:[%s4007_s1 + $0x170] sm:$0xff]  ;;  %v2526_v25 = vld [vmem:[#allocation5 + $0xa8] sm:$0xf0]  ;;  %v2758_v11 = vld [vmem:[#allocation5 + $0x278] sm:$0xf0] }
  0xa3   : > { %1844 = vmatpush.bf16.msrb.mxu3 %v2673_v7  ;;  %1716 = vmatmul.bf16.vlgmr.msra.gmra.mxu0 %v4109_v23  ;;  %v411_v7 = vld [vmem:[%s4007_s1 + $0x160] sm:$0xff] }
  0xa4   : > { %1784 = vmatpush.bf16.msrb.mxu0 %v2505_v60  ;;  %1735 = vmatmul.bf16.vlgmr.msra.gmra.mxu1 %v4111_v24  ;;  %v3305_v60 = vld [vmem:[#allocation5 + $0xb4] sm:$0xf] }
  0xa5   : > { %1803 = vmatpush.bf16.msrb.mxu1 %v2569_v61  ;;  %1754 = vmatmul.bf16.vlgmr.msra.gmra.mxu2 %v4113_v28  ;;  %v2534_v61 = vld [vmem:[#allocation5 + $0xb8] sm:$0xf0] }
  0xa6   : > { %1822 = vmatpush.bf16.msrb.mxu2 %v2633_v39  ;;  %v2478_v39 = vld [vmem:[#allocation5 + $0x48] sm:$0xf0]  ;;  %3178 = vmatmul.msk.bf16.vlgmr.msra.gmra.mxu3 %vm1549_vm0, %v4115_v29  ;;  %v2537_v15 = vor.u32 %v3305_v60, %v2534_v61 }
  0xa7   : > { %1845 = vmatpush.bf16.msrb.mxu3 %v2665_v33  ;;  %v2481_v47 = vor.u32 %v3291_v36, %v2478_v39  ;;  %v3285_v36 = vld [vmem:[#allocation5 + $0x14] sm:$0xf]  ;;  %v4130_v39 = vpack.c.bf16 %v411_v7, %v399_v4  ;;  %v2446_v61 = vld [vmem:[#allocation5 + $0x8] sm:$0xf0]  ;;  %v2886_v7 = vld [vmem:[#allocation5 + $0x378] sm:$0xf0] }
  0xa8   : > { %1785 = vmatpush.bf16.msrb.mxu0 %v2497_v18  ;;  %v2638_v18 = vld [vmem:[#allocation5 + $0x188] sm:$0xf0]  ;;  %v2457_v59 = vor.u32 %v3285_v36, %v2454_v41  ;;  %v3393_v4 = vld [vmem:[#allocation5 + $0x374] sm:$0xf]  ;;  %v3403_v36 = vld [vmem:[#allocation5 + $0x3c4] sm:$0xf] }
  0xa9   : > { %1804 = vmatpush.bf16.msrb.mxu1 %v2561_v19  ;;  %v401_v19 = vld [vmem:[%s4007_s1 + $0x110] sm:$0xff]  ;;  %v2641_v33 = vor.u32 %v3331_v17, %v2638_v18  ;;  %v2449_v18 = vor.u32 %v3283_v55, %v2446_v61  ;;  %v2742_v55 = vld [vmem:[#allocation5 + $0x258] sm:$0xf0] }
  0xaa   : > { %1823 = vmatpush.bf16.msrb.mxu2 %v2625_v63  ;;  %v3319_v63 = vld [vmem:[#allocation5 + $0x124] sm:$0xf]  ;;  %v4134_v45 = vpack.c.bf16 %v413_v20, %v401_v19  ;;  %v3405_v20 = vld [vmem:[#allocation5 + $0x3d4] sm:$0xf]  ;;  %v2918_v61 = vld [vmem:[#allocation5 + $0x3b8] sm:$0xf0] }
  0xab   : > { %1846 = vmatpush.bf16.msrb.mxu3 %v2657_v46  ;;  %v2593_v31 = vor.u32 %v3319_v63, %v2590_v2  ;;  %v4136_v46 = vpack.c.bf16 %v414_v27, %v402_v26  ;;  %v2942_v63 = vld [vmem:[#allocation5 + $0x3e8] sm:$0xf0]  ;;  %v3299_v2 = vld [vmem:[#allocation5 + $0x84] sm:$0xf] }
  0xac   : > { %1786 = vmatpush.bf16.msrb.mxu0 %v2489_v34  ;;  %v2465_v34 = vor.u32 %v3287_v16, %v2462_v21  ;;  %v2822_v16 = vld [vmem:[#allocation5 + $0x2f8] sm:$0xf0]  ;;  %v3391_v26 = vld [vmem:[#allocation5 + $0x364] sm:$0xf] }
  0xad   : > { %1805 = vmatpush.bf16.msrb.mxu1 %v2553_v35  ;;  %v2529_v35 = vor.u32 %v3303_v22, %v2526_v25  ;;  %v2934_v21 = vld [vmem:[#allocation5 + $0x3d8] sm:$0xf0]  ;;  %v2889_v22 = vor.u32 %v3393_v4, %v2886_v7  ;;  %v2761_v25 = vor.u32 %v3361_v10, %v2758_v11  ;;  %v3355_v7 = vld [vmem:[#allocation5 + $0x244] sm:$0xf]  ;;  %v2734_v10 = vld [vmem:[#allocation5 + $0x248] sm:$0xf0] }
  0xae   : > { %1824 = vmatpush.bf16.msrb.mxu2 %v2617_v30  ;;  %v3317_v30 = vld [vmem:[#allocation5 + $0x114] sm:$0xf]  ;;  %v3371_v11 = vld [vmem:[#allocation5 + $0x2c4] sm:$0xf] }
  0xaf   : > { %1847 = vmatpush.bf16.msrb.mxu3 %v2649_v3  ;;  %v2510_v3 = vld [vmem:[#allocation5 + $0x88] sm:$0xf0] }
  0xb0   : > { %1787 = vmatpush.bf16.msrb.mxu0 %v2481_v47  ;;  %v2585_v47 = vor.u32 %v3317_v30, %v2582_v32  ;;  %v2513_v19 = vor.u32 %v3299_v2, %v2510_v3  ;;  %v2878_v30 = vld [vmem:[#allocation5 + $0x368] sm:$0xf0]  ;;  %v3387_v2 = vld [vmem:[#allocation5 + $0x344] sm:$0xf] }
  0xb1   : > { %1806 = vmatpush.bf16.msrb.mxu1 %v2545_v49  ;;  %v3315_v49 = vld [vmem:[#allocation5 + $0x104] sm:$0xf]  ;;  %v2750_v32 = vld [vmem:[#allocation5 + $0x268] sm:$0xf0]  ;;  %v2881_v38 = vor.u32 %v3391_v26, %v2878_v30  ;;  %v2726_v26 = vld [vmem:[#allocation5 + $0x238] sm:$0xf0] }
  0xb2   : > { %1825 = vmatpush.bf16.msrb.mxu2 %v2609_v42  ;;  %v3301_v42 = vld [vmem:[#allocation5 + $0x94] sm:$0xf]  ;;  %v2862_v3 = vld [vmem:[#allocation5 + $0x348] sm:$0xf0] }
  0xb3   : > { %1848 = vmatpush.bf16.msrb.mxu3 %v2641_v33  ;;  %v2521_v60 = vor.u32 %v3301_v42, %v2518_v43  ;;  %1721 = vmatmul.bf16.gmra.mxu0 %v4130_v39  ;;  %v3375_v33 = vld [vmem:[#allocation5 + $0x2e4] sm:$0xf]  ;;  %v3389_v43 = vld [vmem:[#allocation5 + $0x354] sm:$0xf] }
  0xb4   : > { %1788 = vmatpush.bf16.msrb.mxu0 %v2473_v12  ;;  %1740 = vmatmul.bf16.gmra.mxu1 %v4132_v40  ;;  %v2577_v12 = vor.u32 %v3315_v49, %v2574_v52  ;;  %v2929_v49 = vor.u32 %v3403_v36, %v2926_v37  ;;  %v3357_v52 = vld [vmem:[#allocation5 + $0x254] sm:$0xf]  ;;  %v2718_v36 = vld [vmem:[#allocation5 + $0x228] sm:$0xf0]  ;;  %v3367_v37 = vld [vmem:[#allocation5 + $0x2a4] sm:$0xf] }
  0xb5   : > { %1807 = vmatpush.bf16.msrb.mxu1 %v2537_v15  ;;  %1759 = vmatmul.bf16.gmra.mxu2 %v4134_v45  ;;  %v3377_v15 = vld [vmem:[#allocation5 + $0x2f4] sm:$0xf] }
  0xb6   : > { %1826 = vmatpush.bf16.msrb.mxu2 %v2601_v62  ;;  %v3407_v62 = vld [vmem:[#allocation5 + $0x3e4] sm:$0xf]  ;;  %3179 = vmatmul.msk.bf16.gmra.mxu3 %vm1549_vm0, %v4136_v46  ;;  %v2825_v27 = vor.u32 %v3377_v15, %v2822_v16  ;;  %v2798_v15 = vld [vmem:[#allocation5 + $0x2c8] sm:$0xf0]  ;;  %v3397_v30 = vld [vmem:[#allocation5 + $0x394] sm:$0xf] }
  0xb7   : > { %1917 = vmatpush.bf16.msra.mxu3 %v2953_v58  ;;  %v2945_v17 = vor.u32 %v3407_v62, %v2942_v63  ;;  %v3373_v58 = vld [vmem:[#allocation5 + $0x2d4] sm:$0xf]  ;;  %v2745_v63 = vor.u32 %v3357_v52, %v2742_v55  ;;  %v3399_v16 = vld [vmem:[#allocation5 + $0x3a4] sm:$0xf]  ;;  %v2838_v55 = vld [vmem:[#allocation5 + $0x318] sm:$0xf0] }
  0xb8   : > { %1789 = vmatpush.bf16.msrb.mxu0 %v2465_v34  ;;  %v2814_v34 = vld [vmem:[#allocation5 + $0x2e8] sm:$0xf0]  ;;  %v3381_v52 = vld [vmem:[#allocation5 + $0x314] sm:$0xf] }
  0xb9   : > { %1808 = vmatpush.bf16.msrb.mxu1 %v2529_v35  ;;  %v2937_v35 = vor.u32 %v3405_v20, %v2934_v21  ;;  %v2817_v42 = vor.u32 %v3375_v33, %v2814_v34  ;;  %v3385_v20 = vld [vmem:[#allocation5 + $0x334] sm:$0xf]  ;;  %v2854_v21 = vld [vmem:[#allocation5 + $0x338] sm:$0xf0]  ;;  %v2846_v33 = vld [vmem:[#allocation5 + $0x328] sm:$0xf0] }
  0xba   : > { %1827 = vmatpush.bf16.msrb.mxu2 %v2593_v31  ;;  %v3359_v31 = vld [vmem:[#allocation5 + $0x264] sm:$0xf] }
  0xbb   : > { %1918 = vmatpush.bf16.msra.mxu3 %v2945_v17  ;;  %v2753_v41 = vor.u32 %v3359_v31, %v2750_v32  ;;  %v2910_v17 = vld [vmem:[#allocation5 + $0x3a8] sm:$0xf0]  ;;  %v2902_v31 = vld [vmem:[#allocation5 + $0x398] sm:$0xf0]  ;;  %v3383_v32 = vld [vmem:[#allocation5 + $0x324] sm:$0xf] }
  0xbc   : > { %1790 = vmatpush.bf16.msrb.mxu0 %v2457_v59  ;;  %v2806_v59 = vld [vmem:[#allocation5 + $0x2d8] sm:$0xf0] }
  0xbd   : > { %1809 = vmatpush.bf16.msrb.mxu1 %v2521_v60  ;;  %v3401_v60 = vld [vmem:[#allocation5 + $0x3b4] sm:$0xf]  ;;  %v2809_v4 = vor.u32 %v3373_v58, %v2806_v59 }
  0xbe   : > { %1828 = vmatpush.bf16.msrb.mxu2 %v2585_v47  ;;  %v2870_v47 = vld [vmem:[#allocation5 + $0x358] sm:$0xf0]  ;;  %v3349_v59 = vld [vmem:[#allocation5 + $0x214] sm:$0xf] }
  0xbf   : > { %1919 = vmatpush.bf16.msra.mxu3 %v2937_v35  ;;  %v2873_v62 = vor.u32 %v3389_v43, %v2870_v47  ;;  %v3351_v35 = vld [vmem:[#allocation5 + $0x224] sm:$0xf]  ;;  %v2894_v43 = vld [vmem:[#allocation5 + $0x388] sm:$0xf0]  ;;  %v2849_v47 = vor.u32 %v3383_v32, %v2846_v33 }
  0xc0   : > { %1791 = vmatpush.bf16.msrb.mxu0 %v2449_v18  ;;  %v2865_v18 = vor.u32 %v3387_v2, %v2862_v3  ;;  %v3465_v2 = vld [vmem:[#allocation5 + $0x5b4] sm:$0xf]  ;;  %v3174_v3 = vld [vmem:[#allocation5 + $0x5b8] sm:$0xf0]  ;;  %v3455_v32 = vld [vmem:[#allocation5 + $0x564] sm:$0xf] }
  0xc1   : > { %1810 = vmatpush.bf16.msrb.mxu1 %v2513_v19  ;;  %v2737_v19 = vor.u32 %v3355_v7, %v2734_v10  ;;  %v3379_v10 = vld [vmem:[#allocation5 + $0x304] sm:$0xf]  ;;  %v3134_v33 = vld [vmem:[#allocation5 + $0x568] sm:$0xf0] }
  0xc2   : > { %1829 = vmatpush.bf16.msrb.mxu2 %v2577_v12  ;;  %v2921_v12 = vor.u32 %v3401_v60, %v2918_v61  ;;  %v2710_v60 = vld [vmem:[#allocation5 + $0x218] sm:$0xf0]  ;;  %v3365_v61 = vld [vmem:[#allocation5 + $0x294] sm:$0xf] }
  0xc3   : > { %1920 = vmatpush.bf16.msra.mxu3 %v2929_v49  ;;  %1792 = vmatmul.bf16.vlgmr.msrb.gmra.mxu0 %v4029_v48  ;;  %v3369_v48 = vld [vmem:[#allocation5 + $0x2b4] sm:$0xf]  ;;  %v2721_v49 = vor.u32 %v3351_v35, %v2718_v36  ;;  %v2713_v7 = vor.u32 %v3349_v59, %v2710_v60  ;;  %v3070_v35 = vld [vmem:[#allocation5 + $0x4e8] sm:$0xf0] }
  0xc4   : > { %1860 = vmatpush.bf16.msra.mxu0 %v2761_v25  ;;  %1811 = vmatmul.bf16.vlgmr.msrb.gmra.mxu1 %v4031_v53  ;;  %v3353_v25 = vld [vmem:[#allocation5 + $0x234] sm:$0xf]  ;;  %v2913_v53 = vor.u32 %v3399_v16, %v2910_v17  ;;  %v2702_v16 = vld [vmem:[#allocation5 + $0x208] sm:$0xf0]  ;;  %v3363_v17 = vld [vmem:[#allocation5 + $0x284] sm:$0xf] }
  0xc5   : > { %1879 = vmatpush.bf16.msra.mxu1 %v2825_v27  ;;  %1830 = vmatmul.bf16.vlgmr.msrb.gmra.mxu2 %v4033_v54  ;;  %v2790_v27 = vld [vmem:[#allocation5 + $0x2b8] sm:$0xf0]  ;;  %v2857_v54 = vor.u32 %v3385_v20, %v2854_v21  ;;  %v3457_v20 = vld [vmem:[#allocation5 + $0x574] sm:$0xf] }
  0xc6   : > { %1898 = vmatpush.bf16.msra.mxu2 %v2889_v22  ;;  %1849 = vmatmul.bf16.vlgmr.msrb.gmra.mxu3 %v4035_v57  ;;  %v2801_v22 = vor.u32 %v3371_v11, %v2798_v15  ;;  %v2729_v57 = vor.u32 %v3353_v25, %v2726_v26  ;;  %v2793_v34 = vor.u32 %v3369_v48, %v2790_v27  ;;  %v2830_v11 = vld [vmem:[#allocation5 + $0x308] sm:$0xf0]  ;;  %v3142_v21 = vld [vmem:[#allocation5 + $0x578] sm:$0xf0]  ;;  %v3441_v26 = vld [vmem:[#allocation5 + $0x4f4] sm:$0xf] }
  0xc7   : > { %1921 = vmatpush.bf16.msra.mxu3 %v2921_v12  ;;  %v3347_v12 = vld [vmem:[#allocation5 + $0x204] sm:$0xf]  ;;  %v3014_v25 = vld [vmem:[#allocation5 + $0x478] sm:$0xf0]  ;;  %v3437_v60 = vld [vmem:[#allocation5 + $0x4d4] sm:$0xf] }
  0xc8   : > { %1861 = vmatpush.bf16.msra.mxu0 %v2753_v41  ;;  %v2782_v41 = vld [vmem:[#allocation5 + $0x2a8] sm:$0xf0]  ;;  %v3078_v48 = vld [vmem:[#allocation5 + $0x4f8] sm:$0xf0]  ;;  %v2705_v27 = vor.u32 %v3347_v12, %v2702_v16  ;;  %v3419_v12 = vld [vmem:[#allocation5 + $0x444] sm:$0xf] }
  0xc9   : > { %1880 = vmatpush.bf16.msra.mxu1 %v2817_v42  ;;  %v3395_v42 = vld [vmem:[#allocation5 + $0x384] sm:$0xf]  ;;  %v2785_v58 = vor.u32 %v3367_v37, %v2782_v41  ;;  %v3461_v37 = vld [vmem:[#allocation5 + $0x594] sm:$0xf]  ;;  %v3137_v41 = vor.u32 %v3455_v32, %v3134_v33  ;;  %v2990_v16 = vld [vmem:[#allocation5 + $0x448] sm:$0xf0] }
  0xca   : > { %1899 = vmatpush.bf16.msra.mxu2 %v2881_v38  ;;  %v2905_v38 = vor.u32 %v3397_v30, %v2902_v31  ;;  %v3463_v30 = vld [vmem:[#allocation5 + $0x5a4] sm:$0xf]  ;;  %v3166_v31 = vld [vmem:[#allocation5 + $0x5a8] sm:$0xf0] }
  0xcb   : > { %1922 = vmatpush.bf16.msra.mxu3 %v2913_v53  ;;  %v2833_v53 = vor.u32 %v3379_v10, %v2830_v11  ;;  %v3169_v36 = vor.u32 %v3463_v30, %v3166_v31  ;;  %v3433_v30 = vld [vmem:[#allocation5 + $0x4b4] sm:$0xf]  ;;  %v2974_v33 = vld [vmem:[#allocation5 + $0x428] sm:$0xf0] }
  0xcc   : > { %1862 = vmatpush.bf16.msra.mxu0 %v2745_v63  ;;  %v2774_v63 = vld [vmem:[#allocation5 + $0x298] sm:$0xf0] }
  0xcd   : > { %1881 = vmatpush.bf16.msra.mxu1 %v2809_v4  ;;  %v2841_v4 = vor.u32 %v3381_v52, %v2838_v55  ;;  %v2777_v15 = vor.u32 %v3365_v61, %v2774_v63  ;;  %v3421_v55 = vld [vmem:[#allocation5 + $0x454] sm:$0xf]  ;;  %v3062_v61 = vld [vmem:[#allocation5 + $0x4d8] sm:$0xf0] }
  0xce   : > { %1900 = vmatpush.bf16.msra.mxu2 %v2873_v62  ;;  %v2897_v62 = vor.u32 %v3395_v42, %v2894_v43  ;;  %v3065_v11 = vor.u32 %v3437_v60, %v3062_v61 }
  0xcf   : > { %1923 = vmatpush.bf16.msra.mxu3 %v2905_v38  ;;  %v3158_v38 = vld [vmem:[#allocation5 + $0x598] sm:$0xf0] }
  0xd0   : > { %1863 = vmatpush.bf16.msra.mxu0 %v2737_v19  ;;  %v3177_v19 = vor.u32 %v3465_v2, %v3174_v3  ;;  %v3161_v52 = vor.u32 %v3461_v37, %v3158_v38  ;;  %v3118_v2 = vld [vmem:[#allocation5 + $0x548] sm:$0xf0]  ;;  %v3459_v3 = vld [vmem:[#allocation5 + $0x584] sm:$0xf]  ;;  %v3413_v38 = vld [vmem:[#allocation5 + $0x414] sm:$0xf] }
  0xd1   : > { %1882 = vmatpush.bf16.msra.mxu1 %v2801_v22  ;;  %v3425_v22 = vld [vmem:[#allocation5 + $0x474] sm:$0xf] }
  0xd2   : > { %1901 = vmatpush.bf16.msra.mxu2 %v2865_v18  ;;  %v2766_v18 = vld [vmem:[#allocation5 + $0x288] sm:$0xf0] }
  0xd3   : > { %1924 = vmatpush.bf16.msra.mxu3 %v2897_v62  ;;  %1797 = vmatmul.bf16.gmra.mxu0 %v4049_v44  ;;  %v2769_v44 = vor.u32 %v3363_v17, %v2766_v18  ;;  %v3451_v62 = vld [vmem:[#allocation5 + $0x544] sm:$0xf]  ;;  %v3054_v18 = vld [vmem:[#allocation5 + $0x4c8] sm:$0xf0] }
  0xd4   : > { %1864 = vmatpush.bf16.msra.mxu0 %v2729_v57  ;;  %1816 = vmatmul.bf16.gmra.mxu1 %v4051_v50  ;;  %v3017_v50 = vor.u32 %v3425_v22, %v3014_v25  ;;  %v3081_v57 = vor.u32 %v3441_v26, %v3078_v48  ;;  %v3435_v17 = vld [vmem:[#allocation5 + $0x4c4] sm:$0xf]  ;;  %v2993_v22 = vor.u32 %v3419_v12, %v2990_v16  ;;  %v3417_v26 = vld [vmem:[#allocation5 + $0x434] sm:$0xf] }
  0xd5   : > { %1883 = vmatpush.bf16.msra.mxu1 %v2793_v34  ;;  %1835 = vmatmul.bf16.gmra.mxu2 %v4053_v51  ;;  %v3423_v51 = vld [vmem:[#allocation5 + $0x464] sm:$0xf]  ;;  %v3006_v34 = vld [vmem:[#allocation5 + $0x468] sm:$0xf0]  ;;  %v3057_v25 = vor.u32 %v3435_v17, %v3054_v18 }
  0xd6   : > { %1902 = vmatpush.bf16.msra.mxu2 %v2857_v54  ;;  %1854 = vmatmul.bf16.gmra.mxu3 %v4055_v56  ;;  %v3145_v54 = vor.u32 %v3457_v20, %v3142_v21  ;;  %v3439_v56 = vld [vmem:[#allocation5 + $0x4e4] sm:$0xf]  ;;  %v3009_v42 = vor.u32 %v3423_v51, %v3006_v34  ;;  %v3449_v20 = vld [vmem:[#allocation5 + $0x534] sm:$0xf]  ;;  %v3110_v21 = vld [vmem:[#allocation5 + $0x538] sm:$0xf0] }
  0xd7   : > { %1997 = vmatpush.bf16.msrb.mxu3 %v3177_v19  ;;  %v3073_v43 = vor.u32 %v3439_v56, %v3070_v35  ;;  %v3431_v51 = vld [vmem:[#allocation5 + $0x4a4] sm:$0xf]  ;;  %v3038_v34 = vld [vmem:[#allocation5 + $0x4a8] sm:$0xf0]  ;;  %v3445_v56 = vld [vmem:[#allocation5 + $0x514] sm:$0xf] }
  0xd8   : > { %1865 = vmatpush.bf16.msra.mxu0 %v2721_v49  ;;  %v3126_v49 = vld [vmem:[#allocation5 + $0x558] sm:$0xf0]  ;;  %v3041_v37 = vor.u32 %v3431_v51, %v3038_v34  ;;  %v3467_v51 = vld [vmem:[#allocation8] sm:$0xff] }
  0xd9   : > { %1884 = vmatpush.bf16.msra.mxu1 %v2785_v58  ;;  %v2998_v58 = vld [vmem:[#allocation5 + $0x458] sm:$0xf0] }
  0xda   : > { %1903 = vmatpush.bf16.msra.mxu2 %v2849_v47  ;;  %v3453_v47 = vld [vmem:[#allocation5 + $0x554] sm:$0xf]  ;;  %v3001_v10 = vor.u32 %v3421_v55, %v2998_v58  ;;  %v3094_v35 = vld [vmem:[#allocation5 + $0x518] sm:$0xf0]  ;;  %v3443_v58 = vld [vmem:[#allocation5 + $0x504] sm:$0xf] }
  0xdb   : > { %1998 = vmatpush.bf16.msrb.mxu3 %v3169_v36  ;;  %v3129_v59 = vor.u32 %v3453_v47, %v3126_v49  ;;  %v3429_v47 = vld [vmem:[#allocation5 + $0x494] sm:$0xf]  ;;  %v3030_v49 = vld [vmem:[#allocation5 + $0x498] sm:$0xf0] }
  0xdc   : > { %1866 = vmatpush.bf16.msra.mxu0 %v2713_v7 }
  0xdd   : > { %1885 = vmatpush.bf16.msra.mxu1 %v2777_v15  ;;  %v3121_v15 = vor.u32 %v3451_v62, %v3118_v2  ;;  %v3033_v62 = vor.u32 %v3429_v47, %v3030_v49  ;;  %v3411_v2 = vld [vmem:[#allocation5 + $0x404] sm:$0xf] }
  0xde   : > { %1904 = vmatpush.bf16.msra.mxu2 %v2841_v4  ;;  %v3150_v4 = vld [vmem:[#allocation5 + $0x588] sm:$0xf0] }
  0xdf   : > { %1999 = vmatpush.bf16.msrb.mxu3 %v3161_v52  ;;  %v3153_v19 = vor.u32 %v3459_v3, %v3150_v4  ;;  %v2958_v4 = vld [vmem:[#allocation5 + $0x408] sm:$0xf0] }
  0xe0   : > { %1867 = vmatpush.bf16.msra.mxu0 %v2705_v27  ;;  %v4151_v63 = vpop.f32.mrf.mxu0  ;;  %v2982_v27 = vld [vmem:[#allocation5 + $0x438] sm:$0xf0]  ;;  %v2961_v12 = vor.u32 %v3411_v2, %v2958_v4 }
  0xe1   : > { %1886 = vmatpush.bf16.msra.mxu1 %v2769_v44  ;;  %v4153_v7 = vpop.f32.mrf.mxu1  ;;  %v3102_v44 = vld [vmem:[#allocation5 + $0x528] sm:$0xf0] }
  0xe2   : > { %1905 = vmatpush.bf16.msra.mxu2 %v2833_v53  ;;  %v3113_v53 = vor.u32 %v3449_v20, %v3110_v21 }
  0xe3   : > { %1868 = vmatmul.bf16.vlgmr.msra.gmra.mxu0 %v4069_v0  ;;  %v3046_v0 = vld [vmem:[#allocation5 + $0x4b8] sm:$0xf0]  ;;  %2000 = vmatpush.bf16.msrb.mxu3 %v3153_v19 }
  0xe4   : > { %1936 = vmatpush.bf16.msrb.mxu0 %v3017_v50  ;;  %1887 = vmatmul.bf16.vlgmr.msra.gmra.mxu1 %v4071_v1  ;;  %v3049_v50 = vor.u32 %v3433_v30, %v3046_v0  ;;  %v3474_v19 = vld [vmem:[#allocation8 + $0x38] sm:$0xff] }
  0xe5   : > { %1955 = vmatpush.bf16.msrb.mxu1 %v3081_v57  ;;  %1906 = vmatmul.bf16.vlgmr.msra.gmra.mxu2 %v4073_v5  ;;  %v3447_v5 = vld [vmem:[#allocation5 + $0x524] sm:$0xf]  ;;  %v3470_v30 = vld [vmem:[#allocation8 + $0x18] sm:$0xff] }
  0xe6   : > { %1974 = vmatpush.bf16.msrb.mxu2 %v3145_v54  ;;  %1925 = vmatmul.bf16.vlgmr.msra.gmra.mxu3 %v4075_v6  ;;  %v2985_v54 = vor.u32 %v3417_v26, %v2982_v27  ;;  %v3415_v57 = vld [vmem:[#allocation5 + $0x424] sm:$0xf]  ;;  %v3105_v32 = vor.u32 %v3447_v5, %v3102_v44  ;;  %v4196_v26 = vld [vmem:[#allocation7] sm:$0x3] }
  0xe7   : > { %v2977_v36 = vor.u32 %v3415_v57, %v2974_v33  ;;  %3503 = vmatpush.bf16.msra.mxu3 %v3474_v19  ;;  %v625_v0 = vperm.slane %v4196_v26, 0 }
  0xe8   : > { %1937 = vmatpush.bf16.msrb.mxu0 %v3009_v42  ;;  %v4159_v48 = vpop.f32.mrf.mxu2  ;;  %v4163_v31 = vpop.f32.mrf.mxu0  ;;  %v3097_v42 = vor.u32 %v3445_v56, %v3094_v35 }
  0xe9   : > { %1956 = vmatpush.bf16.msrb.mxu1 %v3073_v43  ;;  %v4161_v1 = vpop.f32.mrf.mxu3  ;;  %v4165_v6 = vpop.f32.mrf.mxu1  ;;  %v2966_v43 = vld [vmem:[#allocation5 + $0x418] sm:$0xf0]  ;;  %v1568_v33 = vadd.f32 %v4163_v31, %v625_v0 }
  0xea   : > { %1975 = vmatpush.bf16.msrb.mxu2 %v3137_v41  ;;  %v2969_v61 = vor.u32 %v3413_v38, %v2966_v43 }
  0xec   : > { %1938 = vmatpush.bf16.msrb.mxu0 %v3001_v10  ;;  %v3427_v10 = vld [vmem:[#allocation5 + $0x484] sm:$0xf] }
  0xed   : > { %1957 = vmatpush.bf16.msrb.mxu1 %v3065_v11  ;;  %v3022_v11 = vld [vmem:[#allocation5 + $0x488] sm:$0xf0] }
  0xee   : > { %1976 = vmatpush.bf16.msrb.mxu2 %v3129_v59  ;;  %v3086_v59 = vld [vmem:[#allocation5 + $0x508] sm:$0xf0] }
  0xef   : > { %v3089_v3 = vor.u32 %v3443_v58, %v3086_v59 }
  0xf0   : > { %1939 = vmatpush.bf16.msrb.mxu0 %v2993_v22  ;;  %v4167_v41 = vpop.f32.mrf.mxu2  ;;  %v4171_v55 = vpop.f32.mrf.mxu0 }
  0xf1   : > { %1958 = vmatpush.bf16.msrb.mxu1 %v3057_v25  ;;  %v4169_v52 = vpop.f32.mrf.mxu3  ;;  %v4173_v60 = vpop.f32.mrf.mxu1  ;;  %v3471_v25 = vld [vmem:[#allocation8 + $0x20] sm:$0xff] }
  0xf2   : > { %1977 = vmatpush.bf16.msrb.mxu2 %v3121_v15  ;;  %v3025_v15 = vor.u32 %v3427_v10, %v3022_v11 }
  0xf3   : > { %1873 = vmatmul.bf16.gmra.mxu0 %v4089_v8  ;;  %v3473_v8 = vld [vmem:[#allocation8 + $0x30] sm:$0xff] }
  0xf4   : > { %1940 = vmatpush.bf16.msrb.mxu0 %v2985_v54  ;;  %1892 = vmatmul.bf16.gmra.mxu1 %v4091_v9  ;;  %v3468_v54 = vld [vmem:[#allocation8 + $0x8] sm:$0xff] }
  0xf5   : > { %1959 = vmatpush.bf16.msrb.mxu1 %v3049_v50  ;;  %1911 = vmatmul.bf16.gmra.mxu2 %v4093_v13 }
  0xf6   : > { %1978 = vmatpush.bf16.msrb.mxu2 %v3113_v53  ;;  %1930 = vmatmul.bf16.gmra.mxu3 %v4095_v14  ;;  %v3472_v14 = vld [vmem:[#allocation8 + $0x28] sm:$0xff] }
  0xf7   : > { %3504 = vmatpush.bf16.msra.mxu3 %v3473_v8 }
  0xf8   : > { %1941 = vmatpush.bf16.msrb.mxu0 %v2977_v36  ;;  %v4179_v16 = vpop.f32.mrf.mxu2  ;;  %v4183_v18 = vpop.f32.mrf.mxu0 }
  0xf9   : > { %1960 = vmatpush.bf16.msrb.mxu1 %v3041_v37  ;;  %v4181_v17 = vpop.f32.mrf.mxu3  ;;  %v4185_v20 = vpop.f32.mrf.mxu1 }
  0xfa   : > { %1979 = vmatpush.bf16.msrb.mxu2 %v3105_v32 }
  0xfb   : > { %3505 = vmatpush.bf16.msra.mxu3 %v3472_v14 }
  0xfc   : > { %1942 = vmatpush.bf16.msrb.mxu0 %v2969_v61 }
  0xfd   : > { %1961 = vmatpush.bf16.msrb.mxu1 %v3033_v62 }
  0xfe   : > { %1980 = vmatpush.bf16.msrb.mxu2 %v3097_v42 }
  0xff   : > { %3506 = vmatpush.bf16.msra.mxu3 %v3471_v25 }
 0x100   : > { %1943 = vmatpush.bf16.msrb.mxu0 %v2961_v12  ;;  %v4187_v9 = vpop.f32.mrf.mxu2  ;;  %v1641_v21 = vpop.f32.mrf.mxu0 }
 0x101   : > { %1962 = vmatpush.bf16.msrb.mxu1 %v3025_v15  ;;  %v4189_v13 = vpop.f32.mrf.mxu3  ;;  %v1660_v22 = vpop.f32.mrf.mxu1 }
 0x102   : > { %1981 = vmatpush.bf16.msrb.mxu2 %v3089_v3 }
 0x103   : > { %1944 = vmatmul.bf16.vlgmr.msrb.gmra.mxu0 %v4109_v23  ;;  %3507 = vmatpush.bf16.msra.mxu3 %v3470_v30  ;;  %v3469_v23 = vld [vmem:[#allocation8 + $0x10] sm:$0xff] }
 0x104   : > { %2156 = vmatpush.bf16.msra.mxu0 %v3474_v19  ;;  %1963 = vmatmul.bf16.vlgmr.msrb.gmra.mxu1 %v4111_v24  ;;  %v1566_v24 = vadd.f32 %v4151_v63, %v625_v0 }
 0x105   : > { %1982 = vmatmul.bf16.vlgmr.msrb.gmra.mxu2 %v4113_v28 }
 0x106   : > { %3180 = vmatmul.msk.bf16.vlgmr.msrb.gmra.mxu3 %vm1549_vm0, %v4115_v29  ;;  %v1585_v50 = vadd.f32 %v4153_v7, %v1566_v24  ;;  %v1587_v7 = vadd.f32 %v4165_v6, %v1568_v33 }
 0x107   : > { %3508 = vmatpush.bf16.msra.mxu3 %v3469_v23 }
 0x108   : > { %2157 = vmatpush.bf16.msra.mxu0 %v3473_v8  ;;  %v1679_v53 = vpop.f32.mrf.mxu2  ;;  %v1643_v5 = vpop.f32.mrf.mxu0  ;;  %v1604_v63 = vadd.f32 %v4159_v48, %v1585_v50 }
 0x109   : > { %v1698_v27 = vpop.f32.mrf.mxu3  ;;  %v1662_v44 = vpop.f32.mrf.mxu1 }
 0x10a   : > { %v1623_v56 = vadd.f32 %v4161_v1, %v1604_v63  ;;  %v1573_v1 = vadd.f32 %v4183_v18, %v625_v0 }
 0x10b   : > { %3509 = vmatpush.bf16.msra.mxu3 %v3468_v54 }
 0x10c   : > { %2158 = vmatpush.bf16.msra.mxu0 %v3472_v14  ;;  %v1642_v36 = vadd.f32 %v1641_v21, %v1623_v56 }
 0x10e   : > { %v1661_v37 = vadd.f32 %v1660_v22, %v1642_v36 }
 0x10f   : > { %3510 = vmatpush.bf16.msra.mxu3 %v3467_v51 }
 0x110   : > { %2159 = vmatpush.bf16.msra.mxu0 %v3471_v25  ;;  %v1681_v28 = vpop.f32.mrf.mxu2  ;;  %v1646_v57 = vpop.f32.mrf.mxu0  ;;  %v1680_v43 = vadd.f32 %v1679_v53, %v1661_v37 }
 0x111   : > { %v1700_v29 = vpop.f32.mrf.mxu3  ;;  %v1665_v32 = vpop.f32.mrf.mxu1 }
 0x112   : > { %v1699_v59 = vadd.f32 %v1698_v27, %v1680_v43 }
 0x113   : > { %1949 = vmatmul.bf16.gmra.mxu0 %v4130_v39  ;;  %v1606_v39 = vadd.f32 %v4167_v41, %v1587_v7 }
 0x114   : > { %2160 = vmatpush.bf16.msra.mxu0 %v3470_v30  ;;  %1968 = vmatmul.bf16.gmra.mxu1 %v4132_v40 }
 0x115   : > { %1987 = vmatmul.bf16.gmra.mxu2 %v4134_v45  ;;  %v1625_v48 = vadd.f32 %v4169_v52, %v1606_v39  ;;  %v1571_v45 = vadd.f32 %v4171_v55, %v625_v0  ;;  %v1592_v52 = vadd.f32 %v4185_v20, %v1573_v1 }
 0x116   : > { %3181 = vmatmul.msk.bf16.gmra.mxu3 %vm1549_vm0, %v4136_v46 }
 0x117   : > { %v1644_v38 = vadd.f32 %v1643_v5, %v1625_v48  ;;  %v1590_v6 = vadd.f32 %v4173_v60, %v1571_v45  ;;  %v1611_v4 = vadd.f32 %v4187_v9, %v1592_v52 }
 0x118   : > { %2161 = vmatpush.bf16.msra.mxu0 %v3469_v23  ;;  %v1684_v34 = vpop.f32.mrf.mxu2  ;;  %v1648_v35 = vpop.f32.mrf.mxu0 }
 0x119   : > { %v1703_v31 = vpop.f32.mrf.mxu3  ;;  %v1667_v40 = vpop.f32.mrf.mxu1  ;;  %v1663_v58 = vadd.f32 %v1662_v44, %v1644_v38  ;;  %v1609_v41 = vadd.f32 %v4179_v16, %v1590_v6  ;;  %v1630_v19 = vadd.f32 %v4189_v13, %v1611_v4 }
 0x11b   : > { %v1682_v61 = vadd.f32 %v1681_v28, %v1663_v58  ;;  %v1628_v3 = vadd.f32 %v4181_v17, %v1609_v41  ;;  %v1649_v14 = vadd.f32 %v1648_v35, %v1630_v19 }
 0x11c   : > { %2162 = vmatpush.bf16.msra.mxu0 %v3468_v54 }
 0x11d   : > { %v1701_v60 = vadd.f32 %v1700_v29, %v1682_v61  ;;  %v1647_v12 = vadd.f32 %v1646_v57, %v1628_v3  ;;  %v1668_v9 = vadd.f32 %v1667_v40, %v1649_v14  ;;  %v3480_v3 = vld [vmem:[#allocation8 + $0x68] sm:$0xff] }
 0x11f   : > { %v1666_v8 = vadd.f32 %v1665_v32, %v1647_v12 }
 0x120   : > { %2163 = vmatpush.bf16.msra.mxu0 %v3467_v51  ;;  %v1686_v46 = vpop.f32.mrf.mxu2  ;;  %v1717_v47 = vpop.f32.mrf.mxu0 }
 0x121   : > { %v1705_v42 = vpop.f32.mrf.mxu3  ;;  %v1736_v49 = vpop.f32.mrf.mxu1  ;;  %v1718_v62 = vadd.f32 %v1717_v47, %v1699_v59  ;;  %v1685_v25 = vadd.f32 %v1684_v34, %v1666_v8  ;;  %v1687_v44 = vadd.f32 %v1686_v46, %v1668_v9  ;;  %v3482_v59 = vld [vmem:[#allocation8 + $0x78] sm:$0xff]  ;;  %v3477_v8 = vld [vmem:[#allocation8 + $0x50] sm:$0xff] }
 0x122   : > { %2175 = vmatpush.bf16.msra.mxu1 %v3482_v59 }
 0x123   : > { %v1737_v15 = vadd.f32 %v1736_v49, %v1718_v62  ;;  %v1704_v5 = vadd.f32 %v1703_v31, %v1685_v25  ;;  %v1706_v50 = vadd.f32 %v1705_v42, %v1687_v44  ;;  %v3481_v62 = vld [vmem:[#allocation8 + $0x70] sm:$0xff] }
 0x126   : > { %2176 = vmatpush.bf16.msra.mxu1 %v3481_v62 }
 0x128   : > { %v1755_v55 = vpop.f32.mrf.mxu2  ;;  %v1719_v10 = vpop.f32.mrf.mxu0 }
 0x129   : > { %v1774_v2 = vpop.f32.mrf.mxu3  ;;  %v1738_v11 = vpop.f32.mrf.mxu1  ;;  %v1720_v18 = vadd.f32 %v1719_v10, %v1701_v60  ;;  %v1756_v16 = vadd.f32 %v1755_v55, %v1737_v15  ;;  %v3479_v10 = vld [vmem:[#allocation8 + $0x60] sm:$0xff]  ;;  %v3478_v15 = vld [vmem:[#allocation8 + $0x58] sm:$0xff] }
 0x12a   : > { %2177 = vmatpush.bf16.msra.mxu1 %v3480_v3 }
 0x12b   : > { %v1739_v21 = vadd.f32 %v1738_v11, %v1720_v18  ;;  %v1775_v53 = vadd.f32 %v1774_v2, %v1756_v16  ;;  %v626_v18 = vperm.slane %v4196_v26, 1 }
 0x12d   : > { %v2012_v23 = vmax.f32 %v1775_v53, 0.0 }
 0x12e   : > { %2178 = vmatpush.bf16.msra.mxu1 %v3479_v10 }
 0x130   : > { %v1757_v20 = vpop.f32.mrf.mxu2  ;;  %v1722_v17 = vpop.f32.mrf.mxu0 }
 0x131   : > { %v1776_v22 = vpop.f32.mrf.mxu3  ;;  %v1758_v27 = vadd.f32 %v1757_v20, %v1739_v21  ;;  %v1741_v30 = vpop.f32.mrf.mxu1  ;;  %v1723_v29 = vadd.f32 %v1722_v17, %v1704_v5 }
 0x132   : > { %2179 = vmatpush.bf16.msra.mxu1 %v3478_v15 }
 0x133   : > { %v1777_v0 = vadd.f32 %v1776_v22, %v1758_v27  ;;  %v1742_v33 = vadd.f32 %v1741_v30, %v1723_v29  ;;  %v3476_v22 = vld [vmem:[#allocation8 + $0x48] sm:$0xff]  ;;  %v3475_v30 = vld [vmem:[#allocation8 + $0x40] sm:$0xff] }
 0x135   : > { %v2014_v24 = vmax.f32 %v1777_v0, 0.0 }
 0x136   : > { %2180 = vmatpush.bf16.msra.mxu1 %v3477_v8 }
 0x137   : > { %v2020_v28 = vpack.c.bf16 %v2014_v24, %v2012_v23 }
 0x138   : > { %v1760_v13 = vpop.f32.mrf.mxu2  ;;  %v1724_v57 = vpop.f32.mrf.mxu0 }
 0x139   : > { %v1779_v54 = vpop.f32.mrf.mxu3  ;;  %2164 = vmatmul.bf16.vlgmr.msra.gmra.mxu0 %v2020_v28  ;;  %v1743_v32 = vpop.f32.mrf.mxu1  ;;  %v1725_v51 = vadd.f32 %v1724_v57, %v1706_v50  ;;  %v1761_v63 = vadd.f32 %v1760_v13, %v1742_v33 }
 0x13a   : > { %2181 = vmatpush.bf16.msra.mxu1 %v3476_v22 }
 0x13b   : > { %v1744_v7 = vadd.f32 %v1743_v32, %v1725_v51  ;;  %v1780_v39 = vadd.f32 %v1779_v54, %v1761_v63 }
 0x13d   : > { %v2016_v48 = vmax.f32 %v1780_v39, 0.0 }
 0x13e   : > { %2182 = vmatpush.bf16.msra.mxu1 %v3475_v30 }
 0x140   : > { %v1762_v34 = vpop.f32.mrf.mxu2  ;;  %v1793_v31 = vpop.f32.mrf.mxu0 }
 0x141   : > { %v1781_v56 = vpop.f32.mrf.mxu3  ;;  %v1763_v35 = vadd.f32 %v1762_v34, %v1744_v7  ;;  %v1812_v40 = vpop.f32.mrf.mxu1  ;;  %v1794_v14 = vadd.f32 %v1793_v31, %v626_v18 }
 0x143   : > { %v1782_v36 = vadd.f32 %v1781_v56, %v1763_v35  ;;  %v1813_v25 = vadd.f32 %v1812_v40, %v1794_v14 }
 0x145   : > { %v2018_v45 = vmax.f32 %v1782_v36, 0.0 }
 0x147   : > { %v2022_v37 = vpack.c.bf16 %v2018_v45, %v2016_v48 }
 0x148   : > { %v1831_v38 = vpop.f32.mrf.mxu2  ;;  %v1795_v42 = vpop.f32.mrf.mxu0 }
 0x149   : > { %v1850_v46 = vpop.f32.mrf.mxu3  ;;  %2169 = vmatmul.bf16.vlgmr.msra.gmra.mxu3 %v2022_v37  ;;  %v1814_v6 = vpop.f32.mrf.mxu1  ;;  %v1796_v17 = vadd.f32 %v1795_v42, %v626_v18  ;;  %v1832_v9 = vadd.f32 %v1831_v38, %v1813_v25 }
 0x14b   : > { %v1815_v0 = vadd.f32 %v1814_v6, %v1796_v17  ;;  %v1851_v44 = vadd.f32 %v1850_v46, %v1832_v9 }
 0x150   : > { %v1833_v43 = vpop.f32.mrf.mxu2  ;;  %v1798_v49 = vpop.f32.mrf.mxu0 }
 0x151   : > { %v1852_v47 = vpop.f32.mrf.mxu3  ;;  %v1817_v1 = vpop.f32.mrf.mxu1  ;;  %v1834_v23 = vadd.f32 %v1833_v43, %v1815_v0  ;;  %v1799_v54 = vadd.f32 %v1798_v49, %v626_v18 }
 0x153   : > { %v1853_v13 = vadd.f32 %v1852_v47, %v1834_v23  ;;  %v1818_v51 = vadd.f32 %v1817_v1, %v1799_v54  ;;  %v3489_v54 = vld [vmem:[#allocation10 + $0x30] sm:$0xff] }
 0x158   : > { %v1836_v58 = vpop.f32.mrf.mxu2  ;;  %v1800_v61 = vpop.f32.mrf.mxu0 }
 0x159   : > { %v4220_v41 = vpop.f32.mrf.mxu3  ;;  %v1819_v52 = vpop.f32.mrf.mxu1  ;;  %v1801_v56 = vadd.f32 %v1800_v61, %v626_v18  ;;  %v1837_v35 = vadd.f32 %v1836_v58, %v1818_v51  ;;  %v3484_v51 = vld [vmem:[#allocation10 + $0x8] sm:$0xff] }
 0x15b   : > { %v1820_v36 = vadd.f32 %v1819_v52, %v1801_v56  ;;  %v1856_v38 = vadd.f32 %v4220_v41, %v1837_v35  ;;  %v3609_v56 = vld [vmem:[%s4271_s4] ss:$0 sm:$0xff] }
 0x160   : > { %v1838_v55 = vpop.f32.mrf.mxu2  ;;  %v1869_v4 = vpop.f32.mrf.mxu0 }
 0x161   : > { %v4222_v2 = vpop.f32.mrf.mxu3  ;;  %v1888_v60 = vpop.f32.mrf.mxu1  ;;  %v1870_v29 = vadd.f32 %v1869_v4, %v1851_v44  ;;  %v1839_v46 = vadd.f32 %v1838_v55, %v1820_v36 }
 0x163   : > { %v1889_v50 = vadd.f32 %v1888_v60, %v1870_v29  ;;  %v1858_v59 = vadd.f32 %v4222_v2, %v1839_v46 }
 0x168   : > { %v1907_v11 = vpop.f32.mrf.mxu2  ;;  %v1871_v19 = vpop.f32.mrf.mxu0 }
 0x169   : > { %v1926_v12 = vpop.f32.mrf.mxu3  ;;  %v1890_v16 = vpop.f32.mrf.mxu1  ;;  %v1872_v57 = vadd.f32 %v1871_v19, %v1853_v13  ;;  %v1908_v63 = vadd.f32 %v1907_v11, %v1889_v50  ;;  %v3490_v13 = vld [vmem:[#allocation10 + $0x38] sm:$0xff]  ;;  %v3488_v50 = vld [vmem:[#allocation10 + $0x28] sm:$0xff] }
 0x16a   : > { %2268 = vmatpush.bf16.msra.mxu2 %v3490_v13 }
 0x16b   : > { %v1891_v39 = vadd.f32 %v1890_v16, %v1872_v57  ;;  %v1927_v31 = vadd.f32 %v1926_v12, %v1908_v63  ;;  %v3487_v57 = vld [vmem:[#allocation10 + $0x20] sm:$0xff] }
 0x16c   : > { %v3483_v63 = vld [vmem:[#allocation10] sm:$0xff] }
 0x16e   : > { %2269 = vmatpush.bf16.msra.mxu2 %v3489_v54 }
 0x170   : > { %v1909_v21 = vpop.f32.mrf.mxu2  ;;  %v1874_v53 = vpop.f32.mrf.mxu0 }
 0x171   : > { %v1928_v20 = vpop.f32.mrf.mxu3  ;;  %v1893_v27 = vpop.f32.mrf.mxu1  ;;  %v1910_v40 = vadd.f32 %v1909_v21, %v1891_v39  ;;  %v1875_v47 = vadd.f32 %v1874_v53, %v1856_v38 }
 0x172   : > { %2270 = vmatpush.bf16.msra.mxu2 %v3488_v50 }
 0x173   : > { %v1929_v42 = vadd.f32 %v1928_v20, %v1910_v40  ;;  %v1894_v62 = vadd.f32 %v1893_v27, %v1875_v47 }
 0x176   : > { %2271 = vmatpush.bf16.msra.mxu2 %v3487_v57 }
 0x178   : > { %v1912_v5 = vpop.f32.mrf.mxu2  ;;  %v1876_v24 = vpop.f32.mrf.mxu0 }
 0x179   : > { %v1931_v26 = vpop.f32.mrf.mxu3  ;;  %v1895_v28 = vpop.f32.mrf.mxu1  ;;  %v1877_v58 = vadd.f32 %v1876_v24, %v1858_v59  ;;  %v1913_v60 = vadd.f32 %v1912_v5, %v1894_v62 }
 0x17b   : > { %v1896_v41 = vadd.f32 %v1895_v28, %v1877_v58  ;;  %v1932_v18 = vadd.f32 %v1931_v26, %v1913_v60 }
 0x180   : > { %v1914_v32 = vpop.f32.mrf.mxu2  ;;  %v1945_v7 = vpop.f32.mrf.mxu0 }
 0x181   : > { %v1933_v33 = vpop.f32.mrf.mxu3  ;;  %v1964_v34 = vpop.f32.mrf.mxu1  ;;  %v1946_v48 = vadd.f32 %v1945_v7, %v1927_v31  ;;  %v1915_v19 = vadd.f32 %v1914_v32, %v1896_v41  ;;  %v3486_v32 = vld [vmem:[#allocation10 + $0x18] sm:$0xff] }
 0x182   : > { %2272 = vmatpush.bf16.msra.mxu2 %v3486_v32 }
 0x183   : > { %v1965_v49 = vadd.f32 %v1964_v34, %v1946_v48  ;;  %v1934_v22 = vadd.f32 %v1933_v33, %v1915_v19  ;;  %v3485_v33 = vld [vmem:[#allocation10 + $0x10] sm:$0xff] }
 0x186   : > { %2273 = vmatpush.bf16.msra.mxu2 %v3485_v33 }
 0x188   : > { %v1983_v45 = vpop.f32.mrf.mxu2  ;;  %v1947_v6 = vpop.f32.mrf.mxu0 }
 0x189   : > { %v2002_v37 = vpop.f32.mrf.mxu3  ;;  %v1966_v43 = vpop.f32.mrf.mxu1  ;;  %v1948_v1 = vadd.f32 %v1947_v6, %v1929_v42  ;;  %v1984_v61 = vadd.f32 %v1983_v45, %v1965_v49 }
 0x18a   : > { %2274 = vmatpush.bf16.msra.mxu2 %v3484_v51 }
 0x18b   : > { %v1967_v3 = vadd.f32 %v1966_v43, %v1948_v1  ;;  %v2003_v10 = vadd.f32 %v2002_v37, %v1984_v61 }
 0x18d   : > { %v2013_v16 = vmax.f32 %v2003_v10, 0.0 }
 0x18e   : > { %2275 = vmatpush.bf16.msra.mxu2 %v3483_v63 }
 0x190   : > { %v1985_v4 = vpop.f32.mrf.mxu2  ;;  %v1950_v12 = vpop.f32.mrf.mxu0 }
 0x191   : > { %v2004_v52 = vpop.f32.mrf.mxu3  ;;  %v1986_v11 = vadd.f32 %v1985_v4, %v1967_v3  ;;  %v1969_v15 = vpop.f32.mrf.mxu1  ;;  %v1951_v21 = vadd.f32 %v1950_v12, %v1932_v18  ;;  %v3610_v4 = vld [vmem:[%s4273_s6] ss:$0 sm:$0xff] }
 0x193   : > { %v2005_v55 = vadd.f32 %v2004_v52, %v1986_v11  ;;  %v1970_v53 = vadd.f32 %v1969_v15, %v1951_v21 }
 0x195   : > { %v2015_v8 = vmax.f32 %v2005_v55, 0.0 }
 0x197   : > { %v2021_v14 = vpack.c.bf16 %v2015_v8, %v2013_v16 }
 0x198   : > { %v1988_v2 = vpop.f32.mrf.mxu2  ;;  %v1952_v25 = vpop.f32.mrf.mxu0 }
 0x199   : > { %v2007_v20 = vpop.f32.mrf.mxu3  ;;  %2183 = vmatmul.bf16.vlgmr.msra.gmra.mxu1 %v2021_v14  ;;  %v1953_v27 = vadd.f32 %v1952_v25, %v1934_v22  ;;  %v1989_v17 = vadd.f32 %v1988_v2, %v1970_v53  ;;  %v1971_v30 = vpop.f32.mrf.mxu1 }
 0x19b   : > { %v1972_v9 = vadd.f32 %v1971_v30, %v1953_v27  ;;  %v2008_v5 = vadd.f32 %v2007_v20, %v1989_v17 }
 0x19d   : > { %v2017_v24 = vmax.f32 %v2008_v5, 0.0 }
 0x1a0   : > { %v1990_v0 = vpop.f32.mrf.mxu2 }
 0x1a1   : > { %v1991_v44 = vadd.f32 %v1990_v0, %v1972_v9  ;;  %v2009_v23 = vpop.f32.mrf.mxu3 }
 0x1a3   : > { %v2010_v26 = vadd.f32 %v2009_v23, %v1991_v44 }
 0x1a5   : > { %v2019_v28 = vmax.f32 %v2010_v26, 0.0 }
 0x1a7   : > { %v2023_v29 = vpack.c.bf16 %v2019_v28, %v2017_v24 }
 0x1a9   : > { %2188 = vmatmul.bf16.gmra.mxu1 %v2023_v29 }
 0x1b6   : > { %v2165_v7 = vpop.f32.mrf.mxu0 }
 0x1b7   : > { %v2166_v35 = vadd.f32 %v3609_v56, %v2165_v7 }
 0x1be   : > { %v2167_v39 = vpop.f32.mrf.mxu0 }
 0x1bf   : > { %v2168_v31 = vadd.f32 %v3609_v56, %v2167_v39 }
 0x1cc   : > { %v2170_v45 = vpop.f32.mrf.mxu3 }
 0x1cd   : > { %v2171_v43 = vadd.f32 %v3609_v56, %v2170_v45 }
 0x1d4   : > { %v2172_v6 = vpop.f32.mrf.mxu3 }
 0x1d5   : > { %v2173_v47 = vadd.f32 %v3609_v56, %v2172_v6 }
 0x216   : > { %v2184_v34 = vpop.f32.mrf.mxu1 }
 0x217   : > { %v2185_v40 = vadd.f32 %v2184_v34, %v2166_v35 }
 0x219   : > { %v2194_v37 = vmax.f32 %v2185_v40, 0.0 }
 0x21e   : > { %v2186_v36 = vpop.f32.mrf.mxu1 }
 0x21f   : > { %v2187_v48 = vadd.f32 %v2186_v36, %v2168_v31 }
 0x221   : > { %v2195_v38 = vmax.f32 %v2187_v48, 0.0 }
 0x223   : > { %v2198_v46 = vpack.c.bf16 %v2195_v38, %v2194_v37 }
 0x225   : > { %2276 = vmatmul.bf16.vlgmr.msra.gmra.mxu2 %v2198_v46 }
 0x226   : > { %v2189_v42 = vpop.f32.mrf.mxu1 }
 0x227   : > { %v2190_v49 = vadd.f32 %v2189_v42, %v2171_v43 }
 0x229   : > { %v2196_v61 = vmax.f32 %v2190_v49, 0.0 }
 0x22e   : > { %v2191_v1 = vpop.f32.mrf.mxu1 }
 0x22f   : > { %v2192_v59 = vadd.f32 %v2191_v1, %v2173_v47 }
 0x231   : > { %v2197_v62 = vmax.f32 %v2192_v59, 0.0 }
 0x233   : > { %v2199_v58 = vpack.c.bf16 %v2197_v62, %v2196_v61 }
 0x235   : > { %2281 = vmatmul.bf16.gmra.mxu2 %v2199_v58 }
 0x2a8   : > { %v2277_v3 = vpop.f32.mrf.mxu2 }
 0x2a9   : > { %v2278_v52 = vadd.f32 %v3610_v4, %v2277_v3 }
 0x2ab   : > { %v2287_v11 = vmax.f32 %v2278_v52, 0.0 }
 0x2b0   : > { %v2279_v60 = vpop.f32.mrf.mxu2 }
 0x2b1   : > { %v2280_v10 = vadd.f32 %v3610_v4, %v2279_v60 }
 0x2b3   : > { %v2288_v12 = vmax.f32 %v2280_v10, 0.0 }
 0x2b5   : > { %v3495_v41 = vpack.c.bf16 %v2288_v12, %v2287_v11 }
 0x2b7   : > { %3496 = vst [vmem:[%s363_s20] sm:$0xff] %v3495_v41  }
 0x2b8   : > { %v2282_v55 = vpop.f32.mrf.mxu2 }
 0x2b9   : > { %v2283_v15 = vadd.f32 %v3610_v4, %v2282_v55 }
 0x2bb   : > { %v2289_v16 = vmax.f32 %v2283_v15, 0.0 }
 0x2c0   : > { %v2284_v18 = vpop.f32.mrf.mxu2 }
 0x2c1   : > { %v2285_v19 = vadd.f32 %v3610_v4, %v2284_v18 }
 0x2c3   : > { %v2290_v8 = vmax.f32 %v2285_v19, 0.0 }
 0x2c5   : > { %v3500_v14 = vpack.c.bf16 %v2290_v8, %v2289_v16 }
 0x2c7   : > { %3502 = vst [vmem:[%s363_s20 + $0x8] sm:$0xff] %v3500_v14  }
 0x2c8   : > { %3788 = shalt.err (!%p3785_p10)
}
 0x2c9   : > { %s3847_s2 = smov 64   ;;  %s3848_s19 = smov 4  }
 0x2ca   : > { %3532 = dma.vmem_to_hbm [thread:$0]  (%p3973_p3), %s2313_s23, 256, %s2315_s11, %s2300_s15, %s3847_s2, %s3847_s2, %s3848_s19  }
 0x2cb PF: > { %s2329_s18 = sand.u32 1, %s3823_s24   ;;  %p4287_p12 = scmp.ge.s32.totalorder %s3835_s27, 2 }
 0x2cc   : > { %s2330_s20 = scalar_lea.sflag [#allocation4], %s2329_s18 }
 0x2cd   : > { %p3552_p13 = pnand %p4287_p12, %p3924_p6 }
 0x2cf   : > { %p3553_p0 = pneg %p3552_p13 }
 0x2d1   : > { %3818 = dma.done.wait (%p3553_p0), %s2330_s20, 256  }
 0x2d2   : > { %3820 = vsyncadd (%p3553_p0), %s2330_s20, 4294967040  ;;  %p22_p5 = scmp.ge.s32.totalorder %s3963_s21, 4   ;;  %s4288_s24 = smov %s3827_s25 }
 0x2d3   : > { %s4289_s25 = smov %s3831_s26  ;;  %s4290_s26 = smov %s3979_s13 }
 0x2d4   : > { %s4291_s27 = smov %s3963_s21  ;;  %24 = sbr.rel (!%p22_p5) target bundleno = 11 (0xb), region = 109 }
 0x2d9   :  { %2336 = vsyncpa [#allocation3], 1 }
 0x2da   :  { %2338 = vsyncpa [#allocation3 + $0x1], 1 }
 0x2db   :  { %2339 = vsyncpa [#allocation6], 1 }
 0x2dc   :  { %2340 = vsyncpa [#allocation9], 1 }
 0x2dd   :  { %2341 = vsyncpa [#allocation4], 1 }
 0x2de   :  { %2343 = vsyncpa [#allocation4 + $0x1], 1 }

</bundles_post_ra>
